<compile_context>
chip_gen: v7x
topology: tpu7x:2x2x1
jax: 0.10.0
libtpu: 0.0.40
codegen_flags: <defaults>
</compile_context>

<pallas_src>
import functools
import math

import jax
import jax.numpy as jnp
from jax import lax
from jax.experimental import pallas as pl
from jax.experimental.pallas import tpu as pltpu


# ------------------------------ Pallas kernel ------------------------------

def _fused_conv_pool_kernel(x_ref, w_ref, o_ref, *, K, Cin, Cout, Wc, Wp2, npr):
    """One (batch, pooled-row-block) per grid step.

    x_ref: (1, 1, 2*npr+K, Wc*Cin)  conv-padded input rows (incl. halo),
                                    interleaved minor dim (w-major, c-minor).
    w_ref: (K*K*Cin, Cout)          bf16 conv weight, t = (ki*K + kj)*Cin + c.
    o_ref: (1, npr, Wp2, Cout)      pooled output rows of this block.
    """
    ncr = 2 * npr + 1                      # conv rows computed by this block
    kkc = K * K * Cin
    x = x_ref[0, 0]                        # (rows_blk, Wc*Cin)  f32
    w = w_ref[...]                         # (kkc, Cout)         bf16, loaded once

    # Group input columns in pairs: R[r, p, v] = x[r, p*2*Cin + v].
    Wh = Wc // 2
    R = x.reshape(x.shape[0], Wh, 2 * Cin)

    # Sliding K*Cin window for conv column 2m+q, built from 2 chunky lane-slices.
    def windows(q):
        pieces, start, remaining, g = [], q * Cin, K * Cin, 0
        while remaining > 0:
            lo = start if g == 0 else 0
            hi = min(2 * Cin, lo + remaining)
            assert g + Wp2 <= Wh
            pieces.append(R[:, g:g + Wp2, lo:hi])
            remaining -= hi - lo
            g += 1
        return jnp.concatenate(pieces, axis=-1)        # (rows_blk, Wp2, K*Cin)

    # Stack the K kernel rows (row-shifted views) along lanes -> depth K*K*Cin.
    def im2col(lhs):
        taps = [lhs[ki:ki + ncr] for ki in range(K)]
        return jnp.concatenate(taps, axis=-1)          # (ncr, Wp2, kkc)

    # Even / odd conv-column parities share the weights; fold them into one dot.
    x_all = jnp.concatenate([im2col(windows(0)), im2col(windows(1))], axis=0)
    x2d = x_all.reshape(2 * ncr * Wp2, kkc).astype(jnp.bfloat16)

    # Single MXU contraction, bf16 in / f32 accumulate.
    conv = jnp.dot(x2d, w, preferred_element_type=jnp.float32)
    conv = conv.reshape(2 * ncr, Wp2, Cout)
    conv_e, conv_o = conv[:ncr], conv[ncr:]            # (ncr, Wp2, Cout)

    # --- MaxPool columns: pooled col j <- conv cols {2j-1, 2j, 2j+1}.
    neg = jnp.full((ncr, 1, Cout), -jnp.inf, dtype=jnp.float32)
    o_shift = jnp.concatenate([neg, conv_o[:, :Wp2 - 1, :]], axis=1)
    colmax = jnp.maximum(jnp.maximum(conv_e, conv_o), o_shift)

    # --- MaxPool rows: pooled row p <- conv rows {2p-1, 2p, 2p+1}.
    # Block-local conv row 0 is the halo row (global conv row 2*npr*r - 1).
    pairs = colmax[0:2 * npr].reshape(npr, 2, Wp2, Cout)
    prev_odd = pairs[:, 0]                                            # row 2p-1
    even = pairs[:, 1]                                                # row 2p
    next_odd = colmax[1:2 * npr + 1].reshape(npr, 2, Wp2, Cout)[:, 1]  # row 2p+1

    # Global top edge: conv row -1 is max-pool padding -> exclude it.
    row_ids = lax.broadcasted_iota(jnp.int32, (npr, 1, 1), 0)
    at_top = jnp.logical_and(pl.program_id(1) == 0, row_ids == 0)
    prev_odd = jnp.where(at_top, -jnp.inf, prev_odd)

    o_ref[0] = jnp.maximum(jnp.maximum(prev_odd, even), next_odd)


# ------------------------------- wrapper (JAX) ------------------------------

def _largest_divisor_leq(n, cap):
    for d in range(min(cap, n), 0, -1):
        if n % d == 0:
            return d
    return 1


@functools.partial(jax.jit, static_argnames=(
    "kernel_size", "stride", "padding",
    "pooling_kernel_size", "pooling_stride", "pooling_padding",
    "block_pooled_rows"))
def tokenizer_forward(x_nchw, conv_weight_oihw, *,
                      kernel_size=3, stride=1, padding=1,
                      pooling_kernel_size=3, pooling_stride=2, pooling_padding=1,
                      block_pooled_rows=8):
    """Tokenizer.forward with n_conv_layers=1, activation=None, max_pool=True,
    conv_bias=False.  Returns (B, seq_len, Cout)."""
    B, Cin, H, W = x_nchw.shape
    Cout = conv_weight_oihw.shape[0]
    K = kernel_size

    # TODO(synk): conv stride != 1, non-(3,2,1) pooling, conv bias, activations
    # and n_conv_layers > 1 are not handled by this fused kernel.
    assert stride == 1, "fused kernel supports conv stride 1 only"
    assert (pooling_kernel_size, pooling_stride, pooling_padding) == (3, 2, 1)

    Hc, Wc = H + 2 * padding, W + 2 * padding
    Ho, Wo = Hc - K + 1, Wc - K + 1
    assert Wc % 2 == 0
    assert Ho % 2 == 0 and Wo % 2 == 0, "conv output must be even for 3/2/1 pooling"
    Hp2, Wp2 = Ho // 2, Wo // 2

    npr = _largest_divisor_leq(Hp2, block_pooled_rows)   # pooled rows per grid step
    NR = Hp2 // npr
    rows_blk = 2 * npr + K                                # input rows incl. halo
    Lw = Wc * Cin

    # ---- layout plumbing (cheap XLA): conv zero-pad (+1 extra zero row on top so
    # every row block sees a uniform halo; the kernel masks the fake conv row -1),
    # interleaved dense minor dim, and overlapping row windows for the grid axis.
    x = x_nchw.astype(jnp.float32)
    xp = jnp.pad(x, ((0, 0), (0, 0), (padding + 1, padding), (padding, padding)))
    xr = jnp.transpose(xp, (0, 2, 3, 1)).reshape(B, Hc + 1, Lw)
    row_idx = 2 * npr * jnp.arange(NR)[:, None] + jnp.arange(rows_blk)[None, :]
    xw = xr[:, row_idx, :]                                # (B, NR, rows_blk, Lw)

    # (Cout, Cin, K, K) -> (K*K*Cin, Cout) with t = (ki*K + kj)*Cin + c, in bf16.
    wmat = jnp.transpose(conv_weight_oihw, (2, 3, 1, 0)).reshape(K * K * Cin, Cout)
    wmat = wmat.astype(jnp.bfloat16)

    kernel = functools.partial(_fused_conv_pool_kernel, K=K, Cin=Cin, Cout=Cout,
                               Wc=Wc, Wp2=Wp2, npr=npr)

    flops = 2 * B * Ho * Wo * Cout * K * K * Cin
    bytes_accessed = int(4 * xw.size + 2 * wmat.size + 4 * B * Hp2 * Wp2 * Cout)

    pooled = pl.pallas_call(
        kernel,
        out_shape=jax.ShapeDtypeStruct((B, Hp2, Wp2, Cout), jnp.float32),
        grid=(B, NR),
        in_specs=[
            pl.BlockSpec((1, 1, rows_blk, Lw), lambda b, r: (b, r, 0, 0)),
            pl.BlockSpec((K * K * Cin, Cout), lambda b, r: (0, 0)),
        ],
        out_specs=pl.BlockSpec((1, npr, Wp2, Cout), lambda b, r: (b, r, 0, 0)),
        compiler_params=pltpu.CompilerParams(
            dimension_semantics=("parallel", "parallel")),
        cost_estimate=pl.CostEstimate(flops=flops, transcendentals=0,
                                      bytes_accessed=bytes_accessed),
    )(xw, wmat)

    # (B, Hp2, Wp2, Cout) -> (B, Hp2*Wp2, Cout)  == flatten(2,3).transpose(-2,-1)
    return pooled.reshape(B, Hp2 * Wp2, Cout)


# ----------------------------------- main -----------------------------------

if __name__ == "__main__":
    kernel_size, stride, padding = 3, 1, 1
    n_input_channels, n_output_channels = 3, 64
    B, H, W = 2, 16, 16

    key = jax.random.PRNGKey(0)
    kx, kw = jax.random.split(key)
    x = jax.random.normal(kx, (B, n_input_channels, H, W), dtype=jnp.float32)

    # Deterministic Kaiming-normal-style conv weight (fan_in mode, gain sqrt(2)).
    fan_in = n_input_channels * kernel_size * kernel_size
    std = math.sqrt(2.0 / fan_in)
    w = std * jax.random.normal(
        kw, (n_output_channels, n_input_channels, kernel_size, kernel_size),
        dtype=jnp.float32)

    out = tokenizer_forward(x, w, kernel_size=kernel_size, stride=stride,
                            padding=padding)
    out = jax.block_until_ready(out)

    # Reference: XLA conv + reduce_window (same semantics as the PyTorch module).
    ref_conv = lax.conv_general_dilated(
        x, w, window_strides=(stride, stride),
        padding=[(padding, padding), (padding, padding)],
        dimension_numbers=("NCHW", "OIHW", "NCHW"))
    ref_pool = lax.reduce_window(
        ref_conv, -jnp.inf, lax.max,
        window_dimensions=(1, 1, 3, 3), window_strides=(1, 1, 2, 2),
        padding=[(0, 0), (0, 0), (1, 1), (1, 1)])
    ref_out = jnp.transpose(ref_pool.reshape(B, n_output_channels, -1), (0, 2, 1))

    assert out.shape == ref_out.shape, (out.shape, ref_out.shape)
    err = float(jnp.max(jnp.abs(out - ref_out)))
    # bf16 MXU inputs with f32 accumulation: ~1e-2 absolute error budget.
    assert jnp.allclose(out, ref_out, rtol=2e-2, atol=2e-2), err
    print("KERNEL_OK")
</pallas_src>

<mosaic_0001>
module attributes {stable_mosaic.version = 11 : i64} {
  func.func @_fused_conv_pool_kernel(%arg0: i32, %arg1: i32, %arg2: memref<1x1x19x54xf32, #tpu.memory_space<vmem>>, %arg3: memref<27x64xbf16, #tpu.memory_space<vmem>>, %arg4: memref<1x8x8x64xf32, #tpu.memory_space<vmem>>) attributes {dimension_semantics = [#tpu.dimension_semantics<parallel>, #tpu.dimension_semantics<parallel>], iteration_bounds = array<i64: 2, 1>, scalar_prefetch = 0 : i64, scratch_operands = 0 : i64, tpu.core_type = #tpu.core_type<tc>, window_params = [{transform_indices = @transform_0, window_bounds = array<i64: 1, 1, 19, 54>}, {pipeline_mode = #tpu.pipeline_mode<synchronous>, transform_indices = @transform_1, window_bounds = array<i64: 27, 64>}, {transform_indices = @transform_2, window_bounds = array<i64: 1, 8, 8, 64>}]} {
    %c0 = arith.constant 0 : index
    %c0_0 = arith.constant 0 : index
    %c0_1 = arith.constant 0 : index
    %c0_2 = arith.constant 0 : index
    %0 = vector.load %arg2[%c0, %c0_0, %c0_1, %c0_2] : memref<1x1x19x54xf32, #tpu.memory_space<vmem>>, vector<1x1x19x54xf32>
    %1 = vector.shape_cast %0 : vector<1x1x19x54xf32> to vector<19x54xf32>
    %c0_3 = arith.constant 0 : index
    %c0_4 = arith.constant 0 : index
    %2 = vector.load %arg3[%c0_3, %c0_4] : memref<27x64xbf16, #tpu.memory_space<vmem>>, vector<27x64xbf16>
    %3 = vector.shape_cast %1 : vector<19x54xf32> to vector<19x9x6xf32>
    %4 = vector.extract_strided_slice %3 {offsets = [0, 0, 0], sizes = [19, 8, 6], strides = [1, 1, 1]} : vector<19x9x6xf32> to vector<19x8x6xf32>
    %5 = vector.extract_strided_slice %3 {offsets = [0, 1, 0], sizes = [19, 8, 3], strides = [1, 1, 1]} : vector<19x9x6xf32> to vector<19x8x3xf32>
    %6 = tpu.concatenate %4, %5 in 2 : vector<19x8x6xf32>, vector<19x8x3xf32> -> vector<19x8x9xf32>
    %7 = vector.extract_strided_slice %6 {offsets = [0, 0, 0], sizes = [17, 8, 9], strides = [1, 1, 1]} : vector<19x8x9xf32> to vector<17x8x9xf32>
    %8 = vector.extract_strided_slice %6 {offsets = [1, 0, 0], sizes = [17, 8, 9], strides = [1, 1, 1]} : vector<19x8x9xf32> to vector<17x8x9xf32>
    %9 = vector.extract_strided_slice %6 {offsets = [2, 0, 0], sizes = [17, 8, 9], strides = [1, 1, 1]} : vector<19x8x9xf32> to vector<17x8x9xf32>
    %10 = tpu.concatenate %7, %8, %9 in 2 : vector<17x8x9xf32>, vector<17x8x9xf32>, vector<17x8x9xf32> -> vector<17x8x27xf32>
    %11 = vector.extract_strided_slice %3 {offsets = [0, 0, 3], sizes = [19, 8, 3], strides = [1, 1, 1]} : vector<19x9x6xf32> to vector<19x8x3xf32>
    %12 = vector.extract_strided_slice %3 {offsets = [0, 1, 0], sizes = [19, 8, 6], strides = [1, 1, 1]} : vector<19x9x6xf32> to vector<19x8x6xf32>
    %13 = tpu.concatenate %11, %12 in 2 : vector<19x8x3xf32>, vector<19x8x6xf32> -> vector<19x8x9xf32>
    %14 = vector.extract_strided_slice %13 {offsets = [0, 0, 0], sizes = [17, 8, 9], strides = [1, 1, 1]} : vector<19x8x9xf32> to vector<17x8x9xf32>
    %15 = vector.extract_strided_slice %13 {offsets = [1, 0, 0], sizes = [17, 8, 9], strides = [1, 1, 1]} : vector<19x8x9xf32> to vector<17x8x9xf32>
    %16 = vector.extract_strided_slice %13 {offsets = [2, 0, 0], sizes = [17, 8, 9], strides = [1, 1, 1]} : vector<19x8x9xf32> to vector<17x8x9xf32>
    %17 = tpu.concatenate %14, %15, %16 in 2 : vector<17x8x9xf32>, vector<17x8x9xf32>, vector<17x8x9xf32> -> vector<17x8x27xf32>
    %18 = tpu.concatenate %10, %17 in 0 : vector<17x8x27xf32>, vector<17x8x27xf32> -> vector<34x8x27xf32>
    %19 = vector.shape_cast %18 : vector<34x8x27xf32> to vector<272x27xf32>
    %20 = arith.truncf %19 : vector<272x27xf32> to vector<272x27xbf16>
    %cst = arith.constant dense<0.000000e+00> : vector<272x64xf32>
    %21 = tpu.matmul %20, %2, %cst {dimension_numbers = #tpu.dot_dimension_numbers<[1], [0], [0], [1], [0, 0, 1, 1], [], []>} : vector<272x27xbf16>, vector<27x64xbf16>, vector<272x64xf32> -> vector<272x64xf32>
    %22 = vector.shape_cast %21 : vector<272x64xf32> to vector<34x8x64xf32>
    %23 = vector.extract_strided_slice %22 {offsets = [0, 0, 0], sizes = [17, 8, 64], strides = [1, 1, 1]} : vector<34x8x64xf32> to vector<17x8x64xf32>
    %24 = vector.extract_strided_slice %22 {offsets = [17, 0, 0], sizes = [17, 8, 64], strides = [1, 1, 1]} : vector<34x8x64xf32> to vector<17x8x64xf32>
    %cst_5 = arith.constant 0xFF800000 : f32
    %25 = vector.broadcast %cst_5 : f32 to vector<17x1x64xf32>
    %26 = vector.extract_strided_slice %24 {offsets = [0, 0, 0], sizes = [17, 7, 64], strides = [1, 1, 1]} : vector<17x8x64xf32> to vector<17x7x64xf32>
    %27 = tpu.concatenate %25, %26 in 1 : vector<17x1x64xf32>, vector<17x7x64xf32> -> vector<17x8x64xf32>
    %28 = arith.maximumf %23, %24 : vector<17x8x64xf32>
    %29 = arith.maximumf %28, %27 : vector<17x8x64xf32>
    %30 = vector.extract_strided_slice %29 {offsets = [0, 0, 0], sizes = [16, 8, 64], strides = [1, 1, 1]} : vector<17x8x64xf32> to vector<16x8x64xf32>
    %31 = vector.shape_cast %30 : vector<16x8x64xf32> to vector<8x2x8x64xf32>
    %32 = vector.extract_strided_slice %31 {offsets = [0, 0, 0, 0], sizes = [8, 1, 8, 64], strides = [1, 1, 1, 1]} : vector<8x2x8x64xf32> to vector<8x1x8x64xf32>
    %33 = vector.shape_cast %32 : vector<8x1x8x64xf32> to vector<8x8x64xf32>
    %34 = vector.extract_strided_slice %31 {offsets = [0, 1, 0, 0], sizes = [8, 1, 8, 64], strides = [1, 1, 1, 1]} : vector<8x2x8x64xf32> to vector<8x1x8x64xf32>
    %35 = vector.shape_cast %34 : vector<8x1x8x64xf32> to vector<8x8x64xf32>
    %36 = vector.extract_strided_slice %29 {offsets = [1, 0, 0], sizes = [16, 8, 64], strides = [1, 1, 1]} : vector<17x8x64xf32> to vector<16x8x64xf32>
    %37 = vector.shape_cast %36 : vector<16x8x64xf32> to vector<8x2x8x64xf32>
    %38 = vector.extract_strided_slice %37 {offsets = [0, 1, 0, 0], sizes = [8, 1, 8, 64], strides = [1, 1, 1, 1]} : vector<8x2x8x64xf32> to vector<8x1x8x64xf32>
    %39 = vector.shape_cast %38 : vector<8x1x8x64xf32> to vector<8x8x64xf32>
    %40 = tpu.iota {dimensions = array<i32: 0>} : vector<8x1x1xi32>
    %c0_i32 = arith.constant 0 : i32
    %41 = arith.cmpi eq, %arg1, %c0_i32 : i32
    %c0_i32_6 = arith.constant 0 : i32
    %42 = vector.broadcast %c0_i32_6 : i32 to vector<8x1x1xi32>
    %43 = arith.cmpi eq, %40, %42 : vector<8x1x1xi32>
    %44 = vector.broadcast %41 : i1 to vector<8x1x1xi1>
    %45 = arith.andi %44, %43 : vector<8x1x1xi1>
    %cst_7 = arith.constant 0xFF800000 : f32
    %46 = vector.shape_cast %45 : vector<8x1x1xi1> to vector<8x1x1xi1>
    %47 = vector.broadcast %46 : vector<8x1x1xi1> to vector<8x8x64xi1>
    %48 = vector.broadcast %cst_7 : f32 to vector<8x8x64xf32>
    %49 = arith.select %47, %48, %33 : vector<8x8x64xi1>, vector<8x8x64xf32>
    %50 = arith.maximumf %49, %35 : vector<8x8x64xf32>
    %51 = arith.maximumf %50, %39 : vector<8x8x64xf32>
    %c0_8 = arith.constant 0 : index
    %c0_9 = arith.constant 0 : index
    %c0_10 = arith.constant 0 : index
    %c0_11 = arith.constant 0 : index
    %52 = vector.load %arg4[%c0_8, %c0_9, %c0_10, %c0_11] : memref<1x8x8x64xf32, #tpu.memory_space<vmem>>, vector<1x8x8x64xf32>
    %53 = vector.shape_cast %52 : vector<1x8x8x64xf32> to vector<8x8x64xf32>
    %54 = vector.shape_cast %51 : vector<8x8x64xf32> to vector<1x8x8x64xf32>
    tpu.vector_store %arg4[%c0_8, %c0_9, %c0_10, %c0_11], %54 {strides = array<i32>} : memref<1x8x8x64xf32, #tpu.memory_space<vmem>>, vector<1x8x8x64xf32>,
    return
  }
  func.func @transform_0(%arg0: i32, %arg1: i32) -> (i32, i32, i32, i32) {
    %c0_i32 = arith.constant 0 : i32
    %c0_i32_0 = arith.constant 0 : i32
    %c0_i32_1 = arith.constant 0 : i32
    return %arg0, %arg1, %c0_i32, %c0_i32_0 : i32, i32, i32, i32
  }
  func.func @transform_1(%arg0: i32, %arg1: i32) -> (i32, i32) {
    %c0_i32 = arith.constant 0 : i32
    %c0_i32_0 = arith.constant 0 : i32
    %c0_i32_1 = arith.constant 0 : i32
    return %c0_i32, %c0_i32_0 : i32, i32
  }
  func.func @transform_2(%arg0: i32, %arg1: i32) -> (i32, i32, i32, i32) {
    %c0_i32 = arith.constant 0 : i32
    %c0_i32_0 = arith.constant 0 : i32
    %c0_i32_1 = arith.constant 0 : i32
    return %arg0, %arg1, %c0_i32, %c0_i32_0 : i32, i32, i32, i32
  }
}

</mosaic_0001>

<bundles_post_ra>
// kernel: tokenizer_forward.1
= control target key start
LH: loop header
LB: loop body
LE: loop exit
PB: predicated region body
PF: predicated region fallthrough
CT: control target
= control target key end

     0   :  { %7 = vsyncpa [#allocation3], 0  ;;  %s3312_s0 = inlined_call_operand.vmem [shape: f32[2,1,19,54], index: 0, kind: input, shape index: {}]   ;;  %s3313_s1 = inlined_call_operand.vmem [shape: bf16[27,64], index: 1, kind: input, shape index: {}]   ;;  %s3314_s2 = inlined_call_operand.hbm [shape: f32[2,8,8,64], index: 2, kind: output, shape index: {}]  }
   0x1   :  { %9 = vsyncpa [#allocation3 + $0x1], 0  ;;  %s2446_s9 = smov 0   ;;  %s2448_s10 = smov 0  }
   0x2   :  { %s2450_s11 = smov 0   ;;  %s2452_s12 = smov 0  }
   0x3   :  { %s2454_s13 = smov 0   ;;  %s2456_s14 = smov 0  }
   0x4 LB: > { %s1820_s15 = sadd.s32 4294967295, %s2408_s14   ;;  %s1821_s16 = sadd.s32 4294967294, %s2408_s14   ;;  %s2408_s14 = sphi %s2456_s14, %s15_s14   ;;  %s2404_s13 = sphi %s2454_s13, %s3321_s13   ;;  %s2400_s12 = sphi %s2452_s12, %s3320_s12   ;;  %s2396_s11 = sphi %s2450_s11, %s3319_s11   ;;  %s2392_s10 = sphi %s2448_s10, %s3318_s10   ;;  %s2388_s9 = sphi %s2446_s9, %s3317_s9  }
   0x5   : > { %s27_s17 = sadd.s32 1, %s2404_s13  ;;  %s85_s18 = sadd.s32 1, %s2396_s11 }
   0x6   : > { %p29_p0 = scmp.ge.s32.totalorder %s27_s17, 2  ;;  %p95_p1 = scmp.ne.s32.totalorder %s2396_s11, %s2392_s10 }
   0x7   : > { %p96_p2 = scmp.eq.s32.totalorder %s1820_s15, 1  ;;  %p101_p3 = scmp.ne.s32.totalorder %s2392_s10, %s2388_s9 }
   0x8   : > { %s3323_s17 = smov (%p29_p0, %s27_s17), 0  ;;  %p102_p5 = scmp.eq.s32.totalorder %s1821_s16, 1 }
   0x9   : > { %p2486_p4 = por %p96_p2, %p95_p1  ;;  %s80_s20 = ssub.s32 %s2404_s13, %s3323_s17 }
   0xa   : > { %p1824_p6 = scmp.ge.s32.totalorder %s2408_s14, 1  ;;  %p83_p7 = scmp.eq.s32.totalorder %s80_s20, 0 }
   0xb   : > { %p2493_p8 = por %p102_p5, %p101_p3  ;;  %p135_p9 = scmp.lt.s32.totalorder %s2408_s14, 3 }
   0xc   : > { %s2499_s22 = scalar_select %p83_p7, %s2396_s11, %s85_s18  }
   0xd   : > { %p136_p10 = pnand %p1824_p6, %p135_p9 }
   0xe   : > { %p161_p11 = scmp.lt.s32.totalorder (!%p136_p10), %s2400_s12, 1  ;;  %v2410_v1 = vmov (!%p136_p10), 0.0   ;;  %s2411_s28 = smov (!%p136_p10), 110   ;;  %v2419_v6 = vmov (!%p136_p10), 1983009808   ;;  %v258_v8 = vlaneseq (!%p136_p10)  ;;  %vm745_vm0 = vcmask (!%p136_p10), 1046528  }
   0xf   : > { %139 = sbr.rel (%p136_p10) target bundleno = 716 (0x2cc), region = 28  ;;  %1871 = vmatprep.subr.bf16.mxu0 (!%p136_p10), %v2410_v1  ;;  %1943 = vmatprep.subr.bf16.mxu1 (!%p136_p10), %v2410_v1  ;;  %s2412_s29 = smov (!%p136_p10), 122   ;;  %v256_v7 = vunpack.c.l.s4 (!%p136_p10), %v2419_v6  ;;  %v2420_v13 = vmov (!%p136_p10), 1934713408   ;;  %vm1404_vm1 = vcmask (!%p136_p10), 1044480   ;;  %vm1405_vm2 = vcmask (!%p136_p10), 1045504  }
  0x10   : > { %s2413_s30 = smov (!%p136_p10), 104   ;;  %s2414_s3 = smov (!%p136_p10), 116   ;;  %v259_v12 = vshrl.u32 (!%p136_p10), %v258_v8, 7  ;;  %v320_v14 = vunpack.c.l.s4 (!%p136_p10), %v2420_v13  ;;  %vm860_vm3 = vcmask (!%p136_p10), 48128   ;;  %vm2425_vm4 = vmmov (!%p136_p10), 0  }
  0x11   : > { %s2415_s4 = smov (!%p136_p10), 92   ;;  %s2416_s5 = smov (!%p136_p10), 98   ;;  %v257_v11 = vunpack.c.0.s8 (!%p136_p10), %v256_v7  ;;  %1875 = vmatprep.mubr.msk.bf16.mxu0 (!%p136_p10), %vm2425_vm4, %v2410_v1  ;;  %1911 = vmatprep.mubr.msk.bf16.mxu1 (!%p136_p10), %vm2425_vm4, %v2410_v1  ;;  %vm1150_vm5 = vcmask (!%p136_p10), 23552   ;;  %vm1000_vm6 = vcmask (!%p136_p10), 72704   ;;  %vm1018_vm7 = vcmask (!%p136_p10), 146432  }
  0x12   : > { %s2417_s6 = smov (!%p136_p10), 80   ;;  %s2418_s7 = smov (!%p136_p10), 86   ;;  %v321_v21 = vunpack.c.0.s8 (!%p136_p10), %v320_v14  ;;  %vm1352_vm8 = vcmask (!%p136_p10), 220160   ;;  %vm1631_vm9 = vcmask (!%p136_p10), 1040384   ;;  %vm1713_vm10 = vcmask (!%p136_p10), 523264  }
  0x13   : > { %v2545_v19 = vsub.s32 (!%p136_p10), %v257_v11, %v259_v12  ;;  %s2421_s8 = smov (!%p136_p10), 6   ;;  %s2422_s15 = smov (!%p136_p10), 3  }
  0x14   : > { %v2553_v33 = vsub.s32 (!%p136_p10), %v321_v21, %v259_v12  ;;  %s2423_s16 = smov (!%p136_p10), 125   ;;  %s2426_s25 = smov (!%p136_p10), 18  }
  0x15   : > { %s2427_s26 = smov (!%p136_p10), 9  }
  0x16   : > { %s162_s23 = scalar_select %p161_p11, %s2400_s12, 1 }
  0x18   : > { %s1947_s24 = smul.u32 24, %s162_s23 }
  0x1a   : > { %s2506_s27 = scalar_lea.vmem %s3312_s0, %s1947_s24 }
  0x1b   : > { %v2509_v0 = vld [vmem:[%s2506_s27] sm:$0xff]  ;;  %v2522_v2 = vld [vmem:[%s2506_s27 + $0x8] sm:$0xff]  ;;  %v2533_v3 = vld [vmem:[%s2506_s27 + $0x10] sm:$0x7]  ;;  %s158_s27 = sand.u32 1, %s2392_s10  }
  0x1c   : > { %200 = vrot.lane.b32.xlu1 %v2509_v0, %s2411_s28  ;;  %182 = vrot.lane.b32.xlu0 %v2509_v0, %s2412_s29 }
  0x20   : > { %209 = vrot.lane.b32.xlu1 %v2509_v0, %s2413_s30  ;;  %191 = vrot.lane.b32.xlu0 %v2509_v0, %s2414_s3 }
  0x24   : > { %227 = vrot.lane.b32.xlu1 %v2509_v0, %s2415_s4  ;;  %218 = vrot.lane.b32.xlu0 %v2509_v0, %s2416_s5 }
  0x28   : > { %245 = vrot.lane.b32.xlu1 %v2509_v0, %s2417_s6  ;;  %236 = vrot.lane.b32.xlu0 %v2509_v0, %s2418_s7 }
  0x2c   : > { %193 = vrot.lane.b32.xlu1 %v2522_v2, %s2414_s3  ;;  %184 = vrot.lane.b32.xlu0 %v2522_v2, %s2412_s29 }
  0x30   : > { %211 = vrot.lane.b32.xlu1 %v2522_v2, %s2413_s30  ;;  %202 = vrot.lane.b32.xlu0 %v2522_v2, %s2411_s28 }
  0x34   : > { %229 = vrot.lane.b32.xlu1 %v2522_v2, %s2415_s4  ;;  %220 = vrot.lane.b32.xlu0 %v2522_v2, %s2416_s5 }
  0x38   : > { %247 = vrot.lane.b32.xlu1 %v2522_v2, %s2417_s6  ;;  %238 = vrot.lane.b32.xlu0 %v2522_v2, %s2418_s7 }
  0x3c   : > { %186 = vrot.lane.b32.xlu0 %v2533_v3, %s2412_s29  ;;  %195 = vrot.lane.b32.xlu1 %v2533_v3, %s2414_s3 }
  0x40   : > { %204 = vrot.lane.b32.xlu0 %v2533_v3, %s2411_s28  ;;  %213 = vrot.lane.b32.xlu1 %v2533_v3, %s2413_s30  ;;  %s1825_s28 = sshll.u32 %s158_s27, 6  ;;  %s1851_s30 = sshll.u32 %s2400_s12, 10 }
  0x41   : > { %s3223_s29 = scalar_lea.vmem [#allocation2], %s1825_s28  ;;  %s3266_s12 = scalar_lea.sflag [#allocation3], %s158_s27 }
  0x42   : > { %s1738_s3 = sshll.u32 %s3223_s29, 4  ;;  %s3260_s3 = int_to_ptr.vmem [resolvable:$true] %s1738_s3 }
  0x44   : > { %222 = vrot.lane.b32.xlu0 %v2533_v3, %s2416_s5  ;;  %231 = vrot.lane.b32.xlu1 %v2533_v3, %s2415_s4 }
  0x48   : > { %240 = vrot.lane.b32.xlu0 %v2533_v3, %s2418_s7  ;;  %249 = vrot.lane.b32.xlu1 %v2533_v3, %s2417_s6  ;;  %s3258_s6 = scalar_lea.hbm %s3314_s2, %s1851_s30  ;;  %s2330_s7 = scalar_lea.vmem %s3260_s3, 1024 }
  0x49   : > { %p2331_p12 = scmp.ne.s32.totalorder %s3260_s3, %s2330_s7 }
  0x4b   : > { %p2332_p13 = pnand %p2331_p12, %p2486_p4 }
  0x4d   : > { %p2333_p0 = pneg %p2332_p13 }
  0x8e   : > { %v201_v4 = vpop.permute.xlu1 %200  ;;  %v183_v5 = vpop.permute.xlu0 %182 }
  0x8f   : > { %v269_v20 = vcombine.low %v183_v5, %v201_v4  ;;  %v270_v22 = vcombine.high %v183_v5, %v201_v4 }
  0x91   : > { %v277_v32 = vrot.slane %v269_v20, %v2545_v19  ;;  %v2558_v36 = vrot.slane %v270_v22, %v2545_v19 }
  0x92   : > { %v210_v9 = vpop.permute.xlu1 %209  ;;  %v192_v10 = vpop.permute.xlu0 %191 }
  0x93   : > { %v253_v17 = vcombine.low %v2509_v0, %v192_v10  ;;  %v254_v18 = vcombine.high %v2509_v0, %v192_v10 }
  0x95   : > { %v261_v27 = vrot.slane %v253_v17, %v2545_v19  ;;  %v2550_v31 = vrot.slane %v254_v18, %v2545_v19 }
  0x96   : > { %v228_v15 = vpop.permute.xlu1 %227  ;;  %v219_v16 = vpop.permute.xlu0 %218 }
  0x97   : > { %v285_v23 = vcombine.low %v210_v9, %v228_v15  ;;  %v286_v24 = vcombine.high %v210_v9, %v228_v15  ;;  %v317_v42 = vcombine.low %v261_v27, %v277_v32  ;;  %v318_v43 = vcombine.high %v261_v27, %v277_v32 }
  0x98   : > { %v333_v46 = vcombine.low %v2550_v31, %v2558_v36 }
  0x99   : > { %v293_v37 = vrot.slane %v285_v23, %v2545_v19  ;;  %v2562_v38 = vrot.slane %v286_v24, %v2545_v19  ;;  %v332_v55 = vrot.slane %v318_v43, %v2553_v33  ;;  %v2592_v58 = vrot.slane %v317_v42, %v2553_v33 }
  0x9a   : > { %v246_v25 = vpop.permute.xlu1 %245  ;;  %v237_v26 = vpop.permute.xlu0 %236  ;;  %v341_v59 = vrot.slane %v333_v46, %v2553_v33 }
  0x9b   : > { %v396_v28 = vrot.slane %v246_v25, %v2545_v19  ;;  %v301_v29 = vcombine.low %v219_v16, %v237_v26  ;;  %v302_v30 = vcombine.high %v219_v16, %v237_v26  ;;  %v389_v44 = vcombine.high %v246_v25, %v2410_v1 }
  0x9c   : > { %v334_v26 = vcombine.high %v2550_v31, %v2558_v36 }
  0x9d   : > { %v404_v34 = vcombine.high %v396_v28, %v2410_v1  ;;  %v309_v35 = vrot.slane %v301_v29, %v2545_v19  ;;  %v2565_v39 = vrot.slane %v302_v30, %v2545_v19  ;;  %v2578_v50 = vrot.slane %v396_v28, %v2553_v33 }
  0x9e   : > { %v2567_v40 = vpop.permute.xlu1 %193  ;;  %v2569_v41 = vpop.permute.xlu0 %184  ;;  %v403_v56 = vrot.slane %v389_v44, %v2545_v19 }
  0x9f   : > { %v418_v45 = vrot.slane %v404_v34, %v2553_v33  ;;  %v349_v47 = vcombine.low %v293_v37, %v309_v35  ;;  %v350_v48 = vcombine.high %v293_v37, %v309_v35  ;;  %v365_v49 = vcombine.low %v2562_v38, %v2565_v39 }
  0xa0   : > { %v426_v61 = vrot.slane %v403_v56, %v2553_v33  ;;  %v434_v62 = vcombine.high %v2578_v50, %v2410_v1  ;;  %v438_v9 = vcombine.low %v2522_v2, %v2567_v40  ;;  %v419_v21 = vcombine.high %v403_v56, %v2410_v1 }
  0xa1   : > { %v2581_v51 = vrot.slane %v349_v47, %v2553_v33  ;;  %v364_v52 = vrot.slane %v350_v48, %v2553_v33  ;;  %v435_v57 = vcombine.high %v418_v45, %v2410_v1  ;;  %v373_v60 = vrot.slane %v365_v49, %v2553_v33 }
  0xa2   : > { %v2584_v53 = vpop.permute.xlu1 %211  ;;  %v2586_v54 = vpop.permute.xlu0 %202  ;;  %v759_v8 = vrot.slane %v426_v61, 1  ;;  %v750_v14 = vrot.slane %v434_v62, 1  ;;  %v753_v15 = vrot.slane %v418_v45, 1  ;;  %v2626_v24 = vrot.slane %v438_v9, %v2545_v19 }
  0xa3   : > { %v2599_v63 = vcombine.high %v332_v55, %v364_v52  ;;  %v2603_v0 = vcombine.high %v2592_v58, %v2581_v51  ;;  %v2605_v4 = vcombine.low %v332_v55, %v364_v52  ;;  %v2607_v5 = vcombine.low %v341_v59, %v373_v60 }
  0xa4   : > { %v756_v7 = vrot.slane %v435_v57, 1  ;;  %v454_v10 = vcombine.low %v2569_v41, %v2586_v54  ;;  %v433_v37 = vrot.slane %v419_v21, %v2553_v33  ;;  %v436_v42 = vcombine.high %v426_v61, %v2410_v1 }
  0xa5   : > { %v755_v12 = vrot.slane %v2599_v63, 1  ;;  %v758_v13 = vrot.slane %v2607_v5, 1  ;;  %v749_v17 = vrot.slane %v2603_v0, 1  ;;  %v752_v18 = vrot.slane %v2605_v4, 1 }
  0xa6   : > { %v2609_v6 = vpop.permute.xlu0 %220  ;;  %v230_v11 = vpop.permute.xlu1 %229  ;;  %v2629_v25 = vrot.slane %v454_v10, %v2545_v19  ;;  %v366_v31 = vcombine.high %v2562_v38, %v2565_v39  ;;  %v2651_v45 = vcombine.high %v341_v59, %v373_v60  ;;  %v439_v46 = vcombine.high %v2522_v2, %v2567_v40 }
  0xa7   : > { %v470_v16 = vcombine.low %v2584_v53, %v230_v11  ;;  %v757_v22 = vsel %vm745_vm0, %v755_v12, %v756_v7  ;;  %v2623_v23 = vsel %vm745_vm0, %v758_v13, %v759_v8  ;;  %v2636_v30 = vsel %vm745_vm0, %v749_v17, %v750_v14 }
  0xa8   : > { %v2038_v27 = vpack.i.bf16 %v2623_v23, %v757_v22  ;;  %v754_v32 = vsel %vm745_vm0, %v752_v18, %v753_v15  ;;  %v502_v36 = vcombine.low %v2626_v24, %v2629_v25  ;;  %v348_v48 = vrot.slane %v334_v26, %v2553_v33 }
  0xa9   : > { %v478_v28 = vrot.slane %v470_v16, %v2545_v19  ;;  %v2023_v43 = vpack.i.bf16 %v754_v32, %v2636_v30  ;;  %v471_v38 = vcombine.high %v2584_v53, %v230_v11  ;;  %v437_v55 = vcombine.high %v433_v37, %v2410_v1 }
  0xaa   : > { %v239_v20 = vpop.permute.xlu0 %238  ;;  %v248_v29 = vpop.permute.xlu1 %247  ;;  %2039 = vrot.lane.b32.xlu1 %v2038_v27, %s2421_s8  ;;  %v762_v56 = vrot.slane %v436_v42, 1  ;;  %v380_v57 = vrot.slane %v366_v31, %v2553_v33  ;;  %v510_v40 = vrot.slane %v502_v36, %v2553_v33  ;;  %v2043_v60 = vpack.i.bf16 %v757_v22, %v754_v32 }
  0xab   : > { %v486_v34 = vcombine.low %v2609_v6, %v239_v20  ;;  %v581_v47 = vrot.slane %v248_v29, %v2545_v19  ;;  %2024 = vrot.lane.b32.xlu0 %v2023_v43, %s2421_s8  ;;  %v487_v59 = vcombine.high %v2609_v6, %v239_v20  ;;  %v2670_v61 = vrot.slane %v439_v46, %v2545_v19 }
  0xac   : > { %v455_v62 = vcombine.high %v2569_v41, %v2586_v54  ;;  %v2028_v7 = vpack.i.bf16 %v2599_v63, %v2605_v4  ;;  %v761_v8 = vrot.slane %v2651_v45, 1  ;;  %v503_v9 = vcombine.high %v2626_v24, %v2629_v25 }
  0xad   : > { %v494_v44 = vrot.slane %v486_v34, %v2545_v19  ;;  %v596_v2 = vrot.slane %v581_v47, %v2553_v33  ;;  %v2680_v10 = vrot.slane %v471_v38, %v2545_v19  ;;  %v2688_v13 = vcombine.low %v348_v48, %v380_v57 }
  0xae   : > { %v2640_v35 = vpop.permute.xlu0 %186  ;;  %v2659_v49 = vpop.permute.xlu1 %195  ;;  %2044 = vrot.lane.b32.xlu1 %v2043_v60, %s2422_s15  ;;  %v763_v54 = vsel %vm745_vm0, %v761_v8, %v762_v56  ;;  %v501_v14 = vrot.slane %v487_v59, %v2545_v19  ;;  %v2692_v17 = vcombine.high %v348_v48, %v380_v57  ;;  %v765_v18 = vrot.slane %v433_v37, 1 }
  0xaf   : > { %v534_v39 = vcombine.low %v478_v28, %v494_v44  ;;  %v535_v6 = vcombine.high %v478_v28, %v494_v44  ;;  %v619_v12 = vcombine.high %v596_v2, %v2410_v1  ;;  %v771_v41 = vrot.slane %v596_v2, 1  ;;  %2029 = vrot.lane.b32.xlu0 %v2028_v7, %s2423_s16 }
  0xb0   : > { %v2048_v15 = vpack.i.bf16 %v763_v54, %v2623_v23  ;;  %v2033_v21 = vpack.i.bf16 %v2651_v45, %v2607_v5  ;;  %v764_v22 = vrot.slane %v2688_v13, 1  ;;  %v768_v24 = vrot.slane %v437_v55, 1 }
  0xb1   : > { %v542_v53 = vrot.slane %v534_v39, %v2553_v33  ;;  %v469_v26 = vrot.slane %v455_v62, %v2545_v19  ;;  %v589_v27 = vcombine.high %v581_v47, %v2410_v1  ;;  %v549_v28 = vrot.slane %v535_v6, %v2553_v33 }
  0xb2   : > { %v2661_v52 = vpop.permute.xlu0 %204  ;;  %v214_v16 = vpop.permute.xlu1 %213  ;;  %2049 = vrot.lane.b32.xlu1 %v2048_v15, %s2422_s15  ;;  %v767_v23 = vrot.slane %v2692_v17, 1  ;;  %v574_v32 = vcombine.high %v248_v29, %v2410_v1  ;;  %v766_v34 = vsel %vm745_vm0, %v764_v22, %v765_v18  ;;  %v517_v31 = vrot.slane %v503_v9, %v2553_v33 }
  0xb3   : > { %v2682_v11 = vcombine.low %v510_v40, %v542_v53  ;;  %2034 = vrot.lane.b32.xlu0 %v2033_v21, %s2423_s16  ;;  %v2707_v42 = vcombine.high %v510_v40, %v542_v53  ;;  %v550_v36 = vcombine.low %v2680_v10, %v501_v14  ;;  %v2058_v43 = vpack.i.bf16 %v2692_v17, %v2688_v13 }
  0xb4   : > { %v774_v44 = vrot.slane %v619_v12, 1  ;;  %v2053_v46 = vpack.i.bf16 %v766_v34, %v763_v54  ;;  %v769_v47 = vsel %vm745_vm0, %v767_v23, %v768_v24  ;;  %v603_v29 = vrot.slane %v589_v27, %v2553_v33 }
  0xb5   : > { %v770_v25 = vrot.slane %v2682_v11, 1  ;;  %v2715_v48 = vcombine.low %v517_v31, %v549_v28  ;;  %v518_v56 = vcombine.low %v2670_v61, %v469_v26  ;;  %v519_v57 = vcombine.high %v2670_v61, %v469_v26 }
  0xb6   : > { %v223_v20 = vpop.permute.xlu0 %222  ;;  %2059 = vrot.lane.b32.xlu1 %v2058_v43, %s2423_s16  ;;  %v232_v38 = vpop.permute.xlu1 %231  ;;  %v588_v2 = vrot.slane %v574_v32, %v2545_v19  ;;  %v773_v40 = vrot.slane %v2707_v42, 1  ;;  %v551_v59 = vcombine.high %v2680_v10, %v501_v14  ;;  %v558_v53 = vrot.slane %v550_v36, %v2553_v33 }
  0xb7   : > { %v772_v37 = vsel %vm745_vm0, %v770_v25, %v771_v41  ;;  %2054 = vrot.lane.b32.xlu0 %v2053_v46, %s2421_s8  ;;  %v623_v60 = vcombine.low %v2533_v3, %v2659_v49  ;;  %v631_v62 = vcombine.low %v2640_v35, %v2661_v52  ;;  %v639_v7 = vcombine.low %v214_v16, %v232_v38 }
  0xb8   : > { %v2073_v39 = vpack.i.bf16 %v772_v37, %v769_v47  ;;  %v2063_v8 = vpack.i.bf16 %v769_v47, %v766_v34  ;;  %v775_v61 = vsel %vm745_vm0, %v773_v40, %v774_v44  ;;  %v620_v6 = vcombine.high %v603_v29, %v2410_v1 }
  0xb9   : > { %v777_v12 = vrot.slane %v603_v29, 1  ;;  %v776_v10 = vrot.slane %v2715_v48, 1  ;;  %v2733_v41 = vcombine.high %v517_v31, %v549_v28  ;;  %v526_v54 = vrot.slane %v518_v56, %v2553_v33 }
  0xba   : > { %v241_v55 = vpop.permute.xlu0 %240  ;;  %2074 = vrot.lane.b32.xlu1 %v2073_v39, %s2421_s8  ;;  %v611_v3 = vrot.slane %v588_v2, %v2553_v33  ;;  %v565_v35 = vrot.slane %v551_v59, %v2553_v33  ;;  %v630_v49 = vrot.slane %v623_v60, %v2545_v19  ;;  %v638_v52 = vrot.slane %v631_v62, %v2545_v19  ;;  %v250_v29 = vpop.permute.xlu1 %249 }
  0xbb   : > { %v647_v9 = vcombine.low %v223_v20, %v241_v55  ;;  %2064 = vrot.lane.b32.xlu0 %v2063_v8, %s2422_s15  ;;  %v2078_v14 = vpack.i.bf16 %v775_v61, %v772_v37  ;;  %v646_v15 = vrot.slane %v639_v7, %v2545_v19  ;;  %v2068_v18 = vpack.i.bf16 %v2707_v42, %v2682_v11 }
  0xbc   : > { %v2745_v20 = vcombine.low %v526_v54, %v558_v53  ;;  %v533_v21 = vrot.slane %v519_v57, %v2553_v33  ;;  %v780_v22 = vrot.slane %v620_v6, 1  ;;  %v778_v24 = vsel %vm745_vm0, %v776_v10, %v777_v12 }
  0xbd   : > { %v654_v16 = vrot.slane %v647_v9, %v2545_v19  ;;  %v779_v25 = vrot.slane %v2733_v41, 1  ;;  %v621_v26 = vcombine.high %v611_v3, %v2410_v1  ;;  %v783_v27 = vrot.slane %v611_v3, 1 }
  0xbe   : > { %2079 = vrot.lane.b32.xlu1 %v2078_v14, %s2422_s15  ;;  %v655_v28 = vcombine.low %v630_v49, %v638_v52  ;;  %v2083_v23 = vpack.i.bf16 %v2733_v41, %v2715_v48  ;;  %v2755_v32 = vcombine.low %v533_v21, %v565_v35  ;;  %v2757_v34 = vcombine.high %v533_v21, %v565_v35 }
  0xbf   : > { %2069 = vrot.lane.b32.xlu0 %v2068_v18, %s2423_s16  ;;  %v671_v37 = vcombine.low %v646_v15, %v654_v16  ;;  %v2088_v31 = vpack.i.bf16 %v778_v24, %v775_v61  ;;  %v2759_v36 = vcombine.high %v526_v54, %v558_v53  ;;  %v782_v43 = vrot.slane %v2745_v20, 1 }
  0xc0   : > { %v604_v44 = vcombine.high %v588_v2, %v2410_v1  ;;  %v781_v46 = vsel %vm745_vm0, %v779_v25, %v780_v22  ;;  %v786_v47 = vrot.slane %v621_v26, 1  ;;  %v656_v38 = vcombine.high %v630_v49, %v638_v52 }
  0xc1   : > { %v663_v39 = vrot.slane %v655_v28, %v2553_v33  ;;  %v672_v55 = vcombine.high %v646_v15, %v654_v16  ;;  %v2103_v56 = vpack.i.bf16 %v2757_v34, %v2755_v32  ;;  %v679_v57 = vrot.slane %v671_v37, %v2553_v33 }
  0xc2   : > { %2084 = vrot.lane.b32.xlu1 %v2083_v23, %s2423_s16  ;;  %v2093_v40 = vpack.i.bf16 %v781_v46, %v778_v24  ;;  %v784_v2 = vsel %vm745_vm0, %v782_v43, %v783_v27  ;;  %v785_v59 = vrot.slane %v2759_v36, 1  ;;  %v618_v53 = vrot.slane %v604_v44, %v2553_v33 }
  0xc3   : > { %2089 = vrot.lane.b32.xlu0 %v2088_v31, %s2421_s8  ;;  %v697_v60 = vrot.slane %v250_v29, %v2545_v19  ;;  %v670_v62 = vrot.slane %v656_v38, %v2553_v33  ;;  %v686_v7 = vrot.slane %v672_v55, %v2553_v33  ;;  %v2113_v8 = vpack.i.bf16 %v784_v2, %v781_v46 }
  0xc4   : > { %v2098_v9 = vpack.i.bf16 %v2759_v36, %v2745_v20  ;;  %v787_v61 = vsel %vm745_vm0, %v785_v59, %v786_v47  ;;  %v2781_v6 = vcombine.low %v663_v39, %v679_v57  ;;  %v622_v12 = vcombine.high %v618_v53, %v2410_v1 }
  0xc5   : > { %v704_v19 = vrot.slane %v697_v60, %v2553_v33  ;;  %v788_v10 = vrot.slane %v2755_v32, 1  ;;  %v789_v54 = vrot.slane %v618_v53, 1  ;;  %v2788_v3 = vcombine.high %v663_v39, %v679_v57  ;;  %v2329_v57 = vld [vmem:[%s3313_s1 + $0x8] sm:$0x3f]  }
  0xc6   : > { %2104 = vrot.lane.b32.xlu1 %v2103_v56, %s2423_s16  ;;  %v2118_v35 = vpack.i.bf16 %v787_v61, %v784_v2  ;;  %v2790_v49 = vcombine.low %v670_v62, %v686_v7  ;;  %v794_v15 = vrot.slane %v2781_v6, 1  ;;  %v791_v18 = vrot.slane %v2757_v34, 1  ;;  %v2328_v56 = vld [vmem:[%s3313_s1] sm:$0xff]  }
  0xc7   : > { %2094 = vrot.lane.b32.xlu0 %v2093_v40, %s2422_s15  ;;  %v795_v52 = vrot.slane %v704_v19, 1  ;;  %v2108_v14 = vpack.i.bf16 %v2788_v3, %v2781_v6  ;;  %v705_v33 = vcombine.high %v704_v19, %v2410_v1  ;;  %v790_v16 = vsel %vm745_vm0, %v788_v10, %v789_v54  ;;  %1872 = vmatpush3.bf16.msra.mxu0 %v2328_v56 }
  0xc8   : > { %v792_v21 = vrot.slane %v622_v12, 1  ;;  %v2802_v22 = vcombine.low %v2592_v58, %v2581_v51  ;;  %v2123_v24 = vpack.i.bf16 %v2603_v0, %v2790_v49  ;;  %v2128_v25 = vpack.i.bf16 %v790_v16, %v787_v61  ;;  %1945 = vmatpush3.bf16.msra.mxu1 %v2328_v56  ;;  %1873 = vmatprep.subr.bf16.mxu0 %v2410_v1 }
  0xc9   : > { %v796_v26 = vsel %vm745_vm0, %v794_v15, %v795_v52  ;;  %v706_v27 = vcombine.high %v697_v60, %v2410_v1  ;;  %v798_v28 = vrot.slane %v705_v33, 1  ;;  %v797_v37 = vrot.slane %v2788_v3, 1  ;;  %1944 = vmatprep.subr.bf16.mxu1 %v2410_v1 }
  0xca   : > { %2114 = vrot.lane.b32.xlu1 %v2113_v8, %s2421_s8  ;;  %v793_v23 = vsel %vm745_vm0, %v791_v18, %v792_v21  ;;  %v746_v51 = vrot.slane %v2802_v22, 1  ;;  %v747_v43 = vrot.slane %v2578_v50, 1  ;;  %v800_v47 = vrot.slane %v2790_v49, 1 }
  0xcb   : > { %2099 = vrot.lane.b32.xlu0 %v2098_v9, %s2423_s16  ;;  %v2138_v31 = vpack.i.bf16 %v796_v26, %v793_v23  ;;  %v2133_v58 = vpack.i.bf16 %v793_v23, %v790_v16  ;;  %v801_v44 = vrot.slane %v706_v27, 1  ;;  %v799_v46 = vsel %vm745_vm0, %v797_v37, %v798_v28 }
  0xcc   : > { %v748_v29 = vsel %vm745_vm0, %v746_v51, %v747_v43  ;;  %v2143_v38 = vpack.i.bf16 %v799_v46, %v796_v26 }
  0xcd   : > { %v2148_v39 = vpack.i.bf16 %v748_v29, %v799_v46  ;;  %v802_v55 = vsel %vm745_vm0, %v800_v47, %v801_v44 }
  0xce   : > { %2119 = vrot.lane.b32.xlu1 %v2118_v35, %s2422_s15  ;;  %v2153_v50 = vpack.i.bf16 %v2636_v30, %v802_v55  ;;  %v2424_v30 = vmov 65535  }
  0xcf   : > { %2109 = vrot.lane.b32.xlu0 %v2108_v14, %s2423_s16  ;;  %v1406_v40 = vsel %vm1404_vm1, 4294967295, %v2424_v30 }
  0xd0   : > { %v1407_v59 = vsel %vm1405_vm2, %v1406_v40, 0 }
  0xd1   : > { %v1409_v60 = vand.u32 %v2329_v57, %v1407_v59 }
  0xd2   : > { %2124 = vrot.lane.b32.xlu1 %v2123_v24, %s2423_s16 }
  0xd3   : > { %2129 = vrot.lane.b32.xlu0 %v2128_v25, %s2421_s8  ;;  %1874 = vmatpush3.bf16.msra.mxu0 %v1409_v60 }
  0xd4   : > { %1946 = vmatpush3.bf16.msra.mxu1 %v1409_v60 }
  0xd6   : > { %2139 = vrot.lane.b32.xlu1 %v2138_v31, %s2421_s8 }
  0xd7   : > { %2134 = vrot.lane.b32.xlu0 %v2133_v58, %s2422_s15 }
  0xda   : > { %2144 = vrot.lane.b32.xlu1 %v2143_v38, %s2422_s15 }
  0xdb   : > { %2149 = vrot.lane.b32.xlu0 %v2148_v39, %s2421_s8 }
  0xdf   : > { %2154 = vrot.lane.b32.xlu0 %v2153_v50, %s2422_s15 }
  0xe3   : > { %839 = vrot.lane.b32.xlu0 %v802_v55, %s2421_s8  ;;  %s2428_s8 = smov [#allocation2]  }
 0x11c   : > { %v2040_v2 = vpop.permute.xlu1 %2039 }
 0x11d   : > { %v2041_v53 = vunpack.i.l.bf16 %v2040_v2  ;;  %v2025_v62 = vpop.permute.xlu0 %2024  ;;  %v2042_v19 = vunpack.i.h.bf16 %v2040_v2 }
 0x11e   : > { %v2027_v7 = vunpack.i.h.bf16 %v2025_v62  ;;  %v2026_v8 = vunpack.i.l.bf16 %v2025_v62 }
 0x11f   : > { %v2839_v9 = vsel %vm860_vm3, %v2599_v63, %v2041_v53 }
 0x120   : > { %v2843_v61 = vsel %vm860_vm3, %v2605_v4, %v2027_v7  ;;  %v2847_v12 = vsel %vm860_vm3, %v2603_v0, %v2026_v8  ;;  %v2045_v10 = vpop.permute.xlu1 %2044  ;;  %v2857_v4 = vsel %vm860_vm3, %v2607_v5, %v2042_v19 }
 0x121   : > { %v2163_v54 = vpack.i.bf16 %v2839_v9, %v2843_v61  ;;  %v2158_v35 = vpack.i.bf16 %v2843_v61, %v2847_v12  ;;  %v2047_v52 = vunpack.i.h.bf16 %v2045_v10  ;;  %v2046_v14 = vunpack.i.l.bf16 %v2045_v10  ;;  %v2030_v63 = vpop.permute.xlu0 %2029 }
 0x122   : > { %v2032_v15 = vunpack.i.h.bf16 %v2030_v63  ;;  %v2031_v33 = vunpack.i.l.bf16 %v2030_v63  ;;  %v2178_v5 = vpack.i.bf16 %v2857_v4, %v2839_v9 }
 0x123   : > { %2164 = vrot.lane.b32.xlu0 %v2163_v54, %s2426_s25  ;;  %2159 = vrot.lane.b32.xlu1 %v2158_v35, %s2427_s26 }
 0x124   : > { %v2050_v0 = vpop.permute.xlu1 %2049  ;;  %v2860_v24 = vsel %vm1150_vm5, %v2031_v33, %v2046_v14  ;;  %v2863_v25 = vsel %vm1150_vm5, %v2032_v15, %v2047_v52 }
 0x125   : > { %v2052_v16 = vunpack.i.h.bf16 %v2050_v0  ;;  %v2051_v18 = vunpack.i.l.bf16 %v2050_v0  ;;  %v2035_v21 = vpop.permute.xlu0 %2034  ;;  %v2168_v23 = vpack.i.bf16 %v2863_v25, %v2860_v24 }
 0x126   : > { %v2037_v26 = vunpack.i.h.bf16 %v2035_v21  ;;  %v2036_v27 = vunpack.i.l.bf16 %v2035_v21 }
 0x127   : > { %1036 = vrot.lane.b32.xlu0 %v2802_v22, %s2423_s16  ;;  %1093 = vrot.lane.b32.xlu1 %v748_v29, %s2422_s15  ;;  %s2334_s15 = sshll.u32 %s2428_s8, 4  ;;  %s2335_s15 = int_to_ptr.vmem [resolvable:$false] %s2334_s15 }
 0x128   : > { %v2060_v28 = vpop.permute.xlu1 %2059  ;;  %v2873_v31 = vsel %vm1150_vm5, %v2036_v27, %v2051_v18  ;;  %v2876_v51 = vsel %vm1150_vm5, %v2037_v26, %v2052_v16  ;;  %s2336_s16 = scalar_lea.vmem %s2335_s15, 2048  ;;  %p2337_p1 = scmp.lt.s32.totalorder %s3260_s3, %s2335_s15 }
 0x129   : > { %v2055_v37 = vpop.permute.xlu0 %2054  ;;  %v2188_v46 = vpack.i.bf16 %v2876_v51, %v2873_v31  ;;  %v2173_v47 = vpack.i.bf16 %v2873_v31, %v2863_v25  ;;  %v2062_v56 = vunpack.i.h.bf16 %v2060_v28  ;;  %v2061_v57 = vunpack.i.l.bf16 %v2060_v28  ;;  %p2338_p2 = scmp.lt.s32.totalorder %s2336_s16, %s2330_s7 }
 0x12a   : > { %v2057_v58 = vunpack.i.h.bf16 %v2055_v37  ;;  %v2056_v43 = vunpack.i.l.bf16 %v2055_v37 }
 0x12b   : > { %2179 = vrot.lane.b32.xlu0 %v2178_v5, %s2427_s26  ;;  %2169 = vrot.lane.b32.xlu1 %v2168_v23, %s2427_s26  ;;  %p2339_p3 = por %p2338_p2, %p2337_p1 }
 0x12c   : > { %v2075_v44 = vpop.permute.xlu1 %2074  ;;  %v2886_v38 = vsel %vm860_vm3, %v2651_v45, %v2056_v43  ;;  %v2890_v39 = vsel %vm860_vm3, %v2688_v13, %v2057_v58 }
 0x12d   : > { %v2065_v29 = vpop.permute.xlu0 %2064  ;;  %v2077_v30 = vunpack.i.h.bf16 %v2075_v44  ;;  %v2076_v40 = vunpack.i.l.bf16 %v2075_v44  ;;  %v2198_v59 = vpack.i.bf16 %v2890_v39, %v2886_v38  ;;  %v2183_v45 = vpack.i.bf16 %v2886_v38, %v2857_v4  ;;  %p2340_p5 = pnand %p2339_p3, %p2333_p0 }
 0x12e   : > { %v2067_v55 = vunpack.i.h.bf16 %v2065_v29  ;;  %v2066_v50 = vunpack.i.l.bf16 %v2065_v29 }
 0x12f   : > { %2189 = vrot.lane.b32.xlu0 %v2188_v46, %s2427_s26  ;;  %2174 = vrot.lane.b32.xlu1 %v2173_v47, %s2426_s25  ;;  %v2912_v19 = vsel %vm860_vm3, %v2692_v17, %v2076_v40  ;;  %v2916_v10 = vsel %vm860_vm3, %v2682_v11, %v2077_v30 }
 0x130   : > { %v2080_v2 = vpop.permute.xlu1 %2079  ;;  %v2899_v13 = vsel %vm1150_vm5, %v2061_v57, %v2066_v50  ;;  %v2902_v60 = vsel %vm1150_vm5, %v2062_v56, %v2067_v55  ;;  %v2218_v33 = vpack.i.bf16 %v2916_v10, %v2912_v19  ;;  %v2203_v17 = vpack.i.bf16 %v2912_v19, %v2890_v39 }
 0x131   : > { %v2070_v53 = vpop.permute.xlu0 %2069  ;;  %v2208_v7 = vpack.i.bf16 %v2902_v60, %v2899_v13  ;;  %v2193_v8 = vpack.i.bf16 %v2899_v13, %v2876_v51  ;;  %v2082_v54 = vunpack.i.h.bf16 %v2080_v2  ;;  %v2081_v35 = vunpack.i.l.bf16 %v2080_v2 }
 0x132   : > { %v2072_v52 = vunpack.i.h.bf16 %v2070_v53  ;;  %v2071_v14 = vunpack.i.l.bf16 %v2070_v53 }
 0x133   : > { %2199 = vrot.lane.b32.xlu0 %v2198_v59, %s2427_s26  ;;  %2184 = vrot.lane.b32.xlu1 %v2183_v45, %s2426_s25 }
 0x134   : > { %v2085_v62 = vpop.permute.xlu1 %2084  ;;  %v2927_v18 = vsel %vm1150_vm5, %v2071_v14, %v2081_v35  ;;  %v2930_v21 = vsel %vm1150_vm5, %v2072_v52, %v2082_v54 }
 0x135   : > { %v2090_v63 = vpop.permute.xlu0 %2089  ;;  %v2228_v27 = vpack.i.bf16 %v2930_v21, %v2927_v18  ;;  %v2213_v28 = vpack.i.bf16 %v2927_v18, %v2902_v60  ;;  %v2087_v44 = vunpack.i.h.bf16 %v2085_v62  ;;  %v2086_v46 = vunpack.i.l.bf16 %v2085_v62 }
 0x136   : > { %v2092_v0 = vunpack.i.h.bf16 %v2090_v63  ;;  %v2091_v11 = vunpack.i.l.bf16 %v2090_v63 }
 0x137   : > { %2209 = vrot.lane.b32.xlu0 %v2208_v7, %s2427_s26  ;;  %2194 = vrot.lane.b32.xlu1 %v2193_v8, %s2426_s25 }
 0x138   : > { %v2920_v15 = vpop.permute.xlu1 %2104  ;;  %v2940_v58 = vsel %vm860_vm3, %v2707_v42, %v2091_v11  ;;  %v2944_v43 = vsel %vm860_vm3, %v2715_v48, %v2092_v0 }
 0x139   : > { %v2095_v16 = vpop.permute.xlu0 %2094  ;;  %v2238_v29 = vpack.i.bf16 %v2944_v43, %v2940_v58  ;;  %v2223_v55 = vpack.i.bf16 %v2940_v58, %v2916_v10 }
 0x13a   : > { %v2097_v5 = vunpack.i.h.bf16 %v2095_v16  ;;  %v2096_v23 = vunpack.i.l.bf16 %v2095_v16 }
 0x13b   : > { %2219 = vrot.lane.b32.xlu0 %v2218_v33, %s2427_s26  ;;  %2204 = vrot.lane.b32.xlu1 %v2203_v17, %s2426_s25 }
 0x13c   : > { %v2115_v26 = vpop.permute.xlu1 %2114  ;;  %v2955_v48 = vsel %vm1150_vm5, %v2086_v46, %v2096_v23  ;;  %v2958_v57 = vsel %vm1150_vm5, %v2087_v44, %v2097_v5  ;;  %v2107_v5 = vunpack.i.h.bf16 %v2920_v15  ;;  %v2106_v23 = vunpack.i.l.bf16 %v2920_v15 }
 0x13d   : > { %v2100_v37 = vpop.permute.xlu0 %2099  ;;  %v2117_v50 = vunpack.i.h.bf16 %v2115_v26  ;;  %v2116_v42 = vunpack.i.l.bf16 %v2115_v26  ;;  %v2248_v30 = vpack.i.bf16 %v2958_v57, %v2955_v48  ;;  %v2233_v40 = vpack.i.bf16 %v2955_v48, %v2930_v21 }
 0x13e   : > { %v2102_v8 = vunpack.i.h.bf16 %v2100_v37  ;;  %v2101_v54 = vunpack.i.l.bf16 %v2100_v37 }
 0x13f   : > { %2229 = vrot.lane.b32.xlu0 %v2228_v27, %s2427_s26  ;;  %2214 = vrot.lane.b32.xlu1 %v2213_v28, %s2426_s25  ;;  %v2968_v53 = vsel %vm860_vm3, %v2733_v41, %v2116_v42  ;;  %v2972_v62 = vsel %vm860_vm3, %v2745_v20, %v2117_v50 }
 0x140   : > { %v2120_v47 = vpop.permute.xlu1 %2119  ;;  %v2258_v35 = vpack.i.bf16 %v2972_v62, %v2968_v53  ;;  %v2243_v52 = vpack.i.bf16 %v2968_v53, %v2944_v43 }
 0x141   : > { %v2952_v56 = vpop.permute.xlu0 %2109  ;;  %v2122_v2 = vunpack.i.h.bf16 %v2120_v47  ;;  %v2121_v59 = vunpack.i.l.bf16 %v2120_v47 }
 0x143   : > { %2239 = vrot.lane.b32.xlu0 %v2238_v29, %s2427_s26  ;;  %2224 = vrot.lane.b32.xlu1 %v2223_v55, %s2426_s25  ;;  %v2983_v63 = vsel %vm1150_vm5, %v2101_v54, %v2121_v59  ;;  %v2986_v20 = vsel %vm1150_vm5, %v2102_v8, %v2122_v2  ;;  %v2111_v8 = vunpack.i.l.bf16 %v2952_v56 }
 0x144   : > { %v2974_v7 = vpop.permute.xlu1 %2124  ;;  %v2268_v0 = vpack.i.bf16 %v2986_v20, %v2983_v63  ;;  %v2253_v11 = vpack.i.bf16 %v2983_v63, %v2958_v57 }
 0x145   : > { %v2130_v45 = vpop.permute.xlu0 %2129 }
 0x146   : > { %v2132_v41 = vunpack.i.h.bf16 %v2130_v45  ;;  %v2131_v14 = vunpack.i.l.bf16 %v2130_v45  ;;  %v2112_v45 = vunpack.i.h.bf16 %v2952_v56 }
 0x147   : > { %2249 = vrot.lane.b32.xlu0 %v2248_v30, %s2427_s26  ;;  %2234 = vrot.lane.b32.xlu1 %v2233_v40, %s2426_s25 }
 0x148   : > { %v2140_v17 = vpop.permute.xlu1 %2139  ;;  %v2996_v27 = vsel %vm860_vm3, %v2759_v36, %v2131_v14  ;;  %v3000_v28 = vsel %vm860_vm3, %v2755_v32, %v2132_v41  ;;  %v2127_v14 = vunpack.i.h.bf16 %v2974_v7 }
 0x149   : > { %v2135_v33 = vpop.permute.xlu0 %2134  ;;  %v2278_v44 = vpack.i.bf16 %v3000_v28, %v2996_v27  ;;  %v2263_v36 = vpack.i.bf16 %v2996_v27, %v2972_v62  ;;  %v2142_v46 = vunpack.i.h.bf16 %v2140_v17  ;;  %v2141_v47 = vunpack.i.l.bf16 %v2140_v17 }
 0x14a   : > { %v2137_v16 = vunpack.i.h.bf16 %v2135_v33  ;;  %v2136_v26 = vunpack.i.l.bf16 %v2135_v33 }
 0x14b   : > { %2259 = vrot.lane.b32.xlu0 %v2258_v35, %s2427_s26  ;;  %2244 = vrot.lane.b32.xlu1 %v2243_v52, %s2426_s25  ;;  %v3024_v40 = vsel %vm860_vm3, %v2757_v34, %v2141_v47  ;;  %v3028_v2 = vsel %vm860_vm3, %v2781_v6, %v2142_v46 }
 0x14c   : > { %v3011_v32 = vsel %vm1150_vm5, %v2106_v23, %v2136_v26  ;;  %v3014_v29 = vsel %vm1150_vm5, %v2107_v5, %v2137_v16  ;;  %v2145_v55 = vpop.permute.xlu1 %2144  ;;  %v2298_v54 = vpack.i.bf16 %v3028_v2, %v3024_v40  ;;  %v2283_v34 = vpack.i.bf16 %v3024_v40, %v3000_v28 }
 0x14d   : > { %v2150_v37 = vpop.permute.xlu0 %2149  ;;  %v2288_v15 = vpack.i.bf16 %v3014_v29, %v3011_v32  ;;  %v2273_v50 = vpack.i.bf16 %v3011_v32, %v2986_v20  ;;  %v2147_v42 = vunpack.i.h.bf16 %v2145_v55  ;;  %v2146_v30 = vunpack.i.l.bf16 %v2145_v55 }
 0x14e   : > { %v2151_v35 = vunpack.i.l.bf16 %v2150_v37  ;;  %v2126_v16 = vunpack.i.l.bf16 %v2974_v7  ;;  %v2152_v7 = vunpack.i.h.bf16 %v2150_v37 }
 0x14f   : > { %2269 = vrot.lane.b32.xlu0 %v2268_v0, %s2427_s26  ;;  %2254 = vrot.lane.b32.xlu1 %v2253_v11, %s2426_s25  ;;  %v3039_v6 = vsel %vm1150_vm5, %v2111_v8, %v2146_v30  ;;  %v1168_v41 = vsel %vm1150_vm5, %v2112_v45, %v2147_v42 }
 0x150   : > { %v2308_v56 = vpack.i.bf16 %v1168_v41, %v3039_v6  ;;  %v2293_v33 = vpack.i.bf16 %v3039_v6, %v3014_v29  ;;  %v878_v0 = vsel %vm860_vm3, %v2788_v3, %v2151_v35 }
 0x151   : > { %v2155_v59 = vpop.permute.xlu0 %2154  ;;  %v2303_v5 = vpack.i.bf16 %v878_v0, %v3028_v2 }
 0x152   : > { %v2157_v52 = vunpack.i.h.bf16 %v2155_v59  ;;  %v2156_v17 = vunpack.i.l.bf16 %v2155_v59  ;;  %v861_v59 = vsel %vm860_vm3, %v2802_v22, %v2152_v7 }
 0x153   : > { %2279 = vrot.lane.b32.xlu0 %v2278_v44, %s2427_s26  ;;  %2264 = vrot.lane.b32.xlu1 %v2263_v36, %s2426_s25 }
 0x154   : > { %v1152_v11 = vsel %vm1150_vm5, %v2127_v14, %v2157_v52  ;;  %v1169_v23 = vsel %vm1150_vm5, %v2126_v16, %v2156_v17 }
 0x155   : > { %v2318_v26 = vpack.i.bf16 %v1152_v11, %v878_v0  ;;  %v840_v44 = vpop.permute.xlu0 %839  ;;  %v2313_v36 = vpack.i.bf16 %v1169_v23, %v1168_v41 }
 0x156   : > { %v879_v3 = vsel %vm860_vm3, %v2790_v49, %v840_v44 }
 0x157   : > { %2289 = vrot.lane.b32.xlu0 %v2288_v15, %s2427_s26  ;;  %2274 = vrot.lane.b32.xlu1 %v2273_v50, %s2426_s25  ;;  %v2323_v46 = vpack.i.bf16 %v2860_v24, %v879_v3 }
 0x15b   : > { %2299 = vrot.lane.b32.xlu0 %v2298_v54, %s2427_s26  ;;  %2284 = vrot.lane.b32.xlu1 %v2283_v34, %s2426_s25 }
 0x15f   : > { %2309 = vrot.lane.b32.xlu0 %v2308_v56, %s2427_s26  ;;  %2294 = vrot.lane.b32.xlu1 %v2293_v33, %s2426_s25 }
 0x163   : > { %2319 = vrot.lane.b32.xlu0 %v2318_v26, %s2427_s26  ;;  %2304 = vrot.lane.b32.xlu1 %v2303_v5, %s2426_s25 }
 0x167   : > { %2314 = vrot.lane.b32.xlu1 %v2313_v36, %s2426_s25 }
 0x16b   : > { %2324 = vrot.lane.b32.xlu1 %v2323_v46, %s2426_s25 }
 0x195   : > { %v2165_v47 = vpop.permute.xlu0 %2164  ;;  %v2160_v55 = vpop.permute.xlu1 %2159 }
 0x196   : > { %v2167_v15 = vunpack.i.h.bf16 %v2165_v47  ;;  %v2166_v50 = vunpack.i.l.bf16 %v2165_v47  ;;  %v2162_v42 = vunpack.i.h.bf16 %v2160_v55  ;;  %v2161_v30 = vunpack.i.l.bf16 %v2160_v55 }
 0x198   : > { %v1002_v49 = vsel %vm1000_vm6, %v2847_v12, %v2162_v42  ;;  %v1001_v45 = vsel %vm1000_vm6, %v861_v59, %v2161_v30 }
 0x199   : > { %v3068_v8 = vpop.permute.xlu0 %1036  ;;  %v3070_v54 = vpop.permute.xlu1 %1093  ;;  %v1019_v37 = vsel %vm1018_vm7, %v1001_v45, %v2166_v50  ;;  %v1020_v34 = vsel %vm1018_vm7, %v1002_v49, %v2167_v15 }
 0x19a   : > { %v1324_v35 = vpack.c.bf16 %v1020_v34, %v1019_v37 }
 0x19c   : > { %1876 = vmatmul.mubr.msk.bf16.vlgmr.msra.gmra.mrb[0].mxu0 %vm1352_vm8, %v1324_v35 }
 0x19d   : > { %v2180_v52 = vpop.permute.xlu0 %2179  ;;  %v2170_v41 = vpop.permute.xlu1 %2169  ;;  %1879 = vmatprep.mubr.msk.bf16.mxu0 %vm2425_vm4, %v2410_v1 }
 0x19e   : > { %v2172_v22 = vunpack.i.h.bf16 %v2170_v41  ;;  %v2171_v12 = vunpack.i.l.bf16 %v2170_v41  ;;  %v2182_v0 = vunpack.i.h.bf16 %v2180_v52  ;;  %v2181_v16 = vunpack.i.l.bf16 %v2180_v52 }
 0x1a0   : > { %v1292_v26 = vsel %vm1000_vm6, %v2860_v24, %v2172_v22  ;;  %v1291_v5 = vsel %vm1000_vm6, %v1152_v11, %v2171_v12  ;;  %v1004_v55 = vsel %vm1000_vm6, %v2839_v9, %v2182_v0  ;;  %v1003_v15 = vsel %vm1000_vm6, %v2843_v61, %v2181_v16 }
 0x1a1   : > { %v2190_v14 = vpop.permute.xlu0 %2189  ;;  %v2175_v56 = vpop.permute.xlu1 %2174 }
 0x1a2   : > { %v2177_v33 = vunpack.i.h.bf16 %v2175_v56  ;;  %v2176_v17 = vunpack.i.l.bf16 %v2175_v56  ;;  %v2192_v50 = vunpack.i.h.bf16 %v2190_v14  ;;  %v2191_v42 = vunpack.i.l.bf16 %v2190_v14 }
 0x1a4   : > { %v1308_v23 = vsel %vm1018_vm7, %v1291_v5, %v2176_v17  ;;  %v1309_v44 = vsel %vm1018_vm7, %v1292_v26, %v2177_v33  ;;  %v1294_v9 = vsel %vm1000_vm6, %v2873_v31, %v2192_v50  ;;  %v1293_v61 = vsel %vm1000_vm6, %v2863_v25, %v2191_v42 }
 0x1a5   : > { %v1333_v36 = vpack.c.bf16 %v1309_v44, %v1308_v23  ;;  %v2200_v3 = vpop.permute.xlu0 %2199  ;;  %v2185_v46 = vpop.permute.xlu1 %2184 }
 0x1a6   : > { %v2187_v7 = vunpack.i.h.bf16 %v2185_v46  ;;  %v2186_v47 = vunpack.i.l.bf16 %v2185_v46  ;;  %v2202_v34 = vunpack.i.h.bf16 %v2200_v3  ;;  %v2201_v35 = vunpack.i.l.bf16 %v2200_v3 }
 0x1a7   : > { %1912 = vmatmul.mubr.msk.bf16.vlgmr.msra.gmra.mrb[0].mxu1 %vm1352_vm8, %v1333_v36 }
 0x1a8   : > { %v1022_v24 = vsel %vm1018_vm7, %v1004_v55, %v2187_v7  ;;  %v1021_v11 = vsel %vm1018_vm7, %v1003_v15, %v2186_v47  ;;  %1915 = vmatprep.mubr.msk.bf16.mxu1 %vm2425_vm4, %v2410_v1  ;;  %v1006_v31 = vsel %vm1000_vm6, %v2886_v38, %v2202_v34  ;;  %v1005_v25 = vsel %vm1000_vm6, %v2857_v4, %v2201_v35 }
 0x1a9   : > { %v1325_v30 = vpack.c.bf16 %v1022_v24, %v1021_v11  ;;  %v2210_v59 = vpop.permute.xlu0 %2209  ;;  %v2195_v49 = vpop.permute.xlu1 %2194 }
 0x1aa   : > { %v2197_v45 = vunpack.i.h.bf16 %v2195_v49  ;;  %v2196_v37 = vunpack.i.l.bf16 %v2195_v49  ;;  %v2212_v17 = vunpack.i.h.bf16 %v2210_v59  ;;  %v2211_v0 = vunpack.i.l.bf16 %v2210_v59 }
 0x1ab   : > { %1880 = vmatmul.mubr.msk.bf16.gmra.mrb[4].mxu0 %vm1352_vm8, %v1325_v30 }
 0x1ac   : > { %v1311_v52 = vsel %vm1018_vm7, %v1294_v9, %v2197_v45  ;;  %v1310_v41 = vsel %vm1018_vm7, %v1293_v61, %v2196_v37  ;;  %1883 = vmatprep.mubr.msk.bf16.mxu0 %vm2425_vm4, %v2410_v1  ;;  %v1296_v38 = vsel %vm1000_vm6, %v2899_v13, %v2212_v17  ;;  %v1295_v4 = vsel %vm1000_vm6, %v2876_v51, %v2211_v0 }
 0x1ad   : > { %v1334_v22 = vpack.c.bf16 %v1311_v52, %v1310_v41  ;;  %v2220_v12 = vpop.permute.xlu0 %2219  ;;  %v2205_v14 = vpop.permute.xlu1 %2204 }
 0x1ae   : > { %v2207_v56 = vunpack.i.h.bf16 %v2205_v14  ;;  %v2206_v33 = vunpack.i.l.bf16 %v2205_v14  ;;  %v2222_v46 = vunpack.i.h.bf16 %v2220_v12  ;;  %v2221_v7 = vunpack.i.l.bf16 %v2220_v12 }
 0x1af   : > { %1916 = vmatmul.mubr.msk.bf16.gmra.mrb[4].mxu1 %vm1352_vm8, %v1334_v22 }
 0x1b0   : > { %v1024_v16 = vsel %vm1018_vm7, %v1006_v31, %v2207_v56  ;;  %v1023_v26 = vsel %vm1018_vm7, %v1005_v25, %v2206_v33  ;;  %1919 = vmatprep.mubr.msk.bf16.mxu1 %vm2425_vm4, %v2410_v1  ;;  %v1008_v13 = vsel %vm1000_vm6, %v2912_v19, %v2222_v46  ;;  %v1007_v51 = vsel %vm1000_vm6, %v2890_v39, %v2221_v7 }
 0x1b1   : > { %v1326_v5 = vpack.c.bf16 %v1024_v16, %v1023_v26  ;;  %v2230_v23 = vpop.permute.xlu0 %2229  ;;  %v2215_v44 = vpop.permute.xlu1 %2214 }
 0x1b2   : > { %v2217_v36 = vunpack.i.h.bf16 %v2215_v44  ;;  %v2216_v3 = vunpack.i.l.bf16 %v2215_v44  ;;  %v2232_v30 = vunpack.i.h.bf16 %v2230_v23  ;;  %v2231_v59 = vunpack.i.l.bf16 %v2230_v23 }
 0x1b3   : > { %1884 = vmatmul.mubr.msk.bf16.gmra.mrb[8].mxu0 %vm1352_vm8, %v1326_v5 }
 0x1b4   : > { %v1313_v47 = vsel %vm1018_vm7, %v1296_v38, %v2217_v36  ;;  %v1312_v55 = vsel %vm1018_vm7, %v1295_v4, %v2216_v3  ;;  %1887 = vmatprep.mubr.msk.bf16.mxu0 %vm2425_vm4, %v2410_v1  ;;  %v1298_v19 = vsel %vm1000_vm6, %v2927_v18, %v2232_v30  ;;  %v1297_v39 = vsel %vm1000_vm6, %v2902_v60, %v2231_v59 }
 0x1b5   : > { %v1335_v15 = vpack.c.bf16 %v1313_v47, %v1312_v55  ;;  %v2240_v50 = vpop.permute.xlu0 %2239  ;;  %v2225_v42 = vpop.permute.xlu1 %2224 }
 0x1b6   : > { %v2227_v24 = vunpack.i.h.bf16 %v2225_v42  ;;  %v2226_v11 = vunpack.i.l.bf16 %v2225_v42  ;;  %v2242_v52 = vunpack.i.h.bf16 %v2240_v50  ;;  %v2241_v41 = vunpack.i.l.bf16 %v2240_v50 }
 0x1b7   : > { %1920 = vmatmul.mubr.msk.bf16.gmra.mrb[8].mxu1 %vm1352_vm8, %v1335_v15 }
 0x1b8   : > { %v1026_v49 = vsel %vm1018_vm7, %v1008_v13, %v2227_v24  ;;  %v1025_v45 = vsel %vm1018_vm7, %v1007_v51, %v2226_v11  ;;  %1923 = vmatprep.mubr.msk.bf16.mxu1 %vm2425_vm4, %v2410_v1  ;;  %v1010_v18 = vsel %vm1000_vm6, %v2940_v58, %v2242_v52  ;;  %v1009_v60 = vsel %vm1000_vm6, %v2916_v10, %v2241_v41 }
 0x1b9   : > { %v1327_v37 = vpack.c.bf16 %v1026_v49, %v1025_v45  ;;  %v2250_v9 = vpop.permute.xlu0 %2249  ;;  %v2235_v61 = vpop.permute.xlu1 %2234 }
 0x1ba   : > { %v2237_v34 = vunpack.i.h.bf16 %v2235_v61  ;;  %v2236_v35 = vunpack.i.l.bf16 %v2235_v61  ;;  %v2252_v17 = vunpack.i.h.bf16 %v2250_v9  ;;  %v2251_v0 = vunpack.i.l.bf16 %v2250_v9 }
 0x1bb   : > { %1888 = vmatmul.mubr.msk.bf16.gmra.mrb[12].mxu0 %vm1352_vm8, %v1327_v37 }
 0x1bc   : > { %v1315_v22 = vsel %vm1018_vm7, %v1298_v19, %v2237_v34  ;;  %v1314_v12 = vsel %vm1018_vm7, %v1297_v39, %v2236_v35  ;;  %1891 = vmatprep.mubr.msk.bf16.mxu0 %vm2425_vm4, %v2410_v1  ;;  %v1300_v58 = vsel %vm1000_vm6, %v2955_v48, %v2252_v17  ;;  %v1299_v10 = vsel %vm1000_vm6, %v2930_v21, %v2251_v0 }
 0x1bd   : > { %v1336_v14 = vpack.c.bf16 %v1315_v22, %v1314_v12  ;;  %v2260_v56 = vpop.permute.xlu0 %2259  ;;  %v2245_v33 = vpop.permute.xlu1 %2244 }
 0x1be   : > { %v2247_v31 = vunpack.i.h.bf16 %v2245_v33  ;;  %v2246_v25 = vunpack.i.l.bf16 %v2245_v33  ;;  %v2262_v38 = vunpack.i.h.bf16 %v2260_v56  ;;  %v2261_v4 = vunpack.i.l.bf16 %v2260_v56 }
 0x1bf   : > { %1924 = vmatmul.mubr.msk.bf16.gmra.mrb[12].mxu1 %vm1352_vm8, %v1336_v14 }
 0x1c0   : > { %v1028_v16 = vsel %vm1018_vm7, %v1010_v18, %v2247_v31  ;;  %v1027_v26 = vsel %vm1018_vm7, %v1009_v60, %v2246_v25  ;;  %1927 = vmatprep.mubr.msk.bf16.mxu1 %vm2425_vm4, %v2410_v1  ;;  %v1012_v48 = vsel %vm1000_vm6, %v2968_v53, %v2262_v38  ;;  %v1011_v21 = vsel %vm1000_vm6, %v2944_v43, %v2261_v4 }
 0x1c1   : > { %v1328_v5 = vpack.c.bf16 %v1028_v16, %v1027_v26  ;;  %v2270_v23 = vpop.permute.xlu0 %2269  ;;  %v2255_v44 = vpop.permute.xlu1 %2254 }
 0x1c2   : > { %v2257_v36 = vunpack.i.h.bf16 %v2255_v44  ;;  %v2256_v3 = vunpack.i.l.bf16 %v2255_v44  ;;  %v2272_v24 = vunpack.i.h.bf16 %v2270_v23  ;;  %v2271_v11 = vunpack.i.l.bf16 %v2270_v23 }
 0x1c3   : > { %1892 = vmatmul.mubr.msk.bf16.gmra.mrb[16].mxu0 %vm1352_vm8, %v1328_v5 }
 0x1c4   : > { %v1317_v46 = vsel %vm1018_vm7, %v1300_v58, %v2257_v36  ;;  %v1316_v7 = vsel %vm1018_vm7, %v1299_v10, %v2256_v3  ;;  %1895 = vmatprep.mubr.msk.bf16.mxu0 %vm2425_vm4, %v2410_v1  ;;  %v1302_v53 = vsel %vm1000_vm6, %v2983_v63, %v2272_v24  ;;  %v1301_v43 = vsel %vm1000_vm6, %v2958_v57, %v2271_v11 }
 0x1c5   : > { %v1337_v47 = vpack.c.bf16 %v1317_v46, %v1316_v7  ;;  %v2280_v55 = vpop.permute.xlu0 %2279  ;;  %v2265_v15 = vpop.permute.xlu1 %2264 }
 0x1c6   : > { %v2267_v50 = vunpack.i.h.bf16 %v2265_v15  ;;  %v2266_v42 = vunpack.i.l.bf16 %v2265_v15  ;;  %v2282_v9 = vunpack.i.h.bf16 %v2280_v55  ;;  %v2281_v61 = vunpack.i.l.bf16 %v2280_v55 }
 0x1c7   : > { %1928 = vmatmul.mubr.msk.bf16.gmra.mrb[16].mxu1 %vm1352_vm8, %v1337_v47 }
 0x1c8   : > { %v1030_v13 = vsel %vm1018_vm7, %v1012_v48, %v2267_v50  ;;  %v1029_v51 = vsel %vm1018_vm7, %v1011_v21, %v2266_v42  ;;  %1931 = vmatprep.mubr.msk.bf16.mxu1 %vm2425_vm4, %v2410_v1  ;;  %v1014_v63 = vsel %vm1000_vm6, %v2996_v27, %v2282_v9  ;;  %v1013_v57 = vsel %vm1000_vm6, %v2972_v62, %v2281_v61 }
 0x1c9   : > { %v1329_v30 = vpack.c.bf16 %v1030_v13, %v1029_v51  ;;  %v2290_v59 = vpop.permute.xlu0 %2289  ;;  %v2275_v49 = vpop.permute.xlu1 %2274 }
 0x1ca   : > { %v2277_v45 = vunpack.i.h.bf16 %v2275_v49  ;;  %v2276_v37 = vunpack.i.l.bf16 %v2275_v49  ;;  %v2292_v12 = vunpack.i.h.bf16 %v2290_v59  ;;  %v2291_v14 = vunpack.i.l.bf16 %v2290_v59 }
 0x1cb   : > { %1896 = vmatmul.mubr.msk.bf16.gmra.mrb[20].mxu0 %vm1352_vm8, %v1329_v30 }
 0x1cc   : > { %v1319_v34 = vsel %vm1018_vm7, %v1302_v53, %v2277_v45  ;;  %v1318_v35 = vsel %vm1018_vm7, %v1301_v43, %v2276_v37  ;;  %1899 = vmatprep.mubr.msk.bf16.mxu0 %vm2425_vm4, %v2410_v1  ;;  %v1304_v27 = vsel %vm1000_vm6, %v3011_v32, %v2292_v12  ;;  %v1303_v62 = vsel %vm1000_vm6, %v2986_v20, %v2291_v14 }
 0x1cd   : > { %v1338_v19 = vpack.c.bf16 %v1319_v34, %v1318_v35  ;;  %v2300_v39 = vpop.permute.xlu0 %2299  ;;  %v2285_v52 = vpop.permute.xlu1 %2284  ;;  %v1151_v32 = vsel %vm1150_vm5, %v3068_v8, %v3070_v54 }
 0x1ce   : > { %v2287_v41 = vunpack.i.h.bf16 %v2285_v52  ;;  %v2286_v22 = vunpack.i.l.bf16 %v2285_v52  ;;  %v2302_v0 = vunpack.i.h.bf16 %v2300_v39  ;;  %v2301_v16 = vunpack.i.l.bf16 %v2300_v39 }
 0x1cf   : > { %1932 = vmatmul.mubr.msk.bf16.gmra.mrb[20].mxu1 %vm1352_vm8, %v1338_v19 }
 0x1d0   : > { %v1032_v56 = vsel %vm1018_vm7, %v1014_v63, %v2287_v41  ;;  %v1031_v33 = vsel %vm1018_vm7, %v1013_v57, %v2286_v22  ;;  %1935 = vmatprep.mubr.msk.bf16.mxu1 %vm2425_vm4, %v2410_v1  ;;  %v1016_v10 = vsel %vm1000_vm6, %v3024_v40, %v2302_v0  ;;  %v1015_v38 = vsel %vm1000_vm6, %v3000_v28, %v2301_v16 }
 0x1d1   : > { %v1330_v31 = vpack.c.bf16 %v1032_v56, %v1031_v33  ;;  %v2310_v25 = vpop.permute.xlu0 %2309  ;;  %v2295_v18 = vpop.permute.xlu1 %2294 }
 0x1d2   : > { %v2297_v60 = vunpack.i.h.bf16 %v2295_v18  ;;  %v2296_v17 = vunpack.i.l.bf16 %v2295_v18  ;;  %v2312_v4 = vunpack.i.h.bf16 %v2310_v25  ;;  %v2311_v46 = vunpack.i.l.bf16 %v2310_v25 }
 0x1d3   : > { %1900 = vmatmul.mubr.msk.bf16.gmra.mrb[24].mxu0 %vm1352_vm8, %v1330_v31 }
 0x1d4   : > { %v1321_v26 = vsel %vm1018_vm7, %v1304_v27, %v2297_v60  ;;  %v1320_v5 = vsel %vm1018_vm7, %v1303_v62, %v2296_v17  ;;  %1903 = vmatprep.mubr.msk.bf16.mxu0 %vm2425_vm4, %v2410_v1  ;;  %v1306_v28 = vsel %vm1000_vm6, %v3039_v6, %v2312_v4  ;;  %v1305_v50 = vsel %vm1000_vm6, %v3014_v29, %v2311_v46 }
 0x1d5   : > { %v1339_v23 = vpack.c.bf16 %v1321_v26, %v1320_v5  ;;  %v2320_v44 = vpop.permute.xlu0 %2319  ;;  %v2305_v36 = vpop.permute.xlu1 %2304 }
 0x1d6   : > { %v2322_v3 = vunpack.i.h.bf16 %v2320_v44  ;;  %v2307_v20 = vunpack.i.h.bf16 %v2305_v36  ;;  %v2306_v58 = vunpack.i.l.bf16 %v2305_v36  ;;  %v2321_v42 = vunpack.i.l.bf16 %v2320_v44 }
 0x1d7   : > { %1936 = vmatmul.mubr.msk.bf16.gmra.mrb[24].mxu1 %vm1352_vm8, %v1339_v23 }
 0x1d8   : > { %v1290_v7 = vsel %vm1000_vm6, %v1151_v32, %v2322_v3  ;;  %v1034_v47 = vsel %vm1018_vm7, %v1016_v10, %v2307_v20  ;;  %v1033_v55 = vsel %vm1018_vm7, %v1015_v38, %v2306_v58  ;;  %1939 = vmatprep.mubr.msk.bf16.mxu1 %vm2425_vm4, %v2410_v1  ;;  %v1017_v6 = vsel %vm1000_vm6, %v3028_v2, %v2321_v42 }
 0x1d9   : > { %v1331_v8 = vpack.c.bf16 %v1034_v47, %v1033_v55  ;;  %v2315_v54 = vpop.permute.xlu1 %2314 }
 0x1da   : > { %v2317_v15 = vunpack.i.h.bf16 %v2315_v54  ;;  %v2316_v40 = vunpack.i.l.bf16 %v2315_v54 }
 0x1db   : > { %1904 = vmatmul.mubr.msk.bf16.gmra.mrb[28].mxu0 %vm1352_vm8, %v1331_v8 }
 0x1dc   : > { %v1323_v48 = vsel %vm1018_vm7, %v1306_v28, %v2317_v15  ;;  %v1322_v21 = vsel %vm1018_vm7, %v1305_v50, %v2316_v40  ;;  %1907 = vmatprep.mubr.msk.bf16.mxu0 %vm2425_vm4, %v2410_v1 }
 0x1dd   : > { %v1340_v24 = vpack.c.bf16 %v1323_v48, %v1322_v21  ;;  %v2325_v11 = vpop.permute.xlu1 %2324 }
 0x1de   : > { %v2327_v13 = vunpack.i.h.bf16 %v2325_v11  ;;  %v2326_v51 = vunpack.i.l.bf16 %v2325_v11 }
 0x1df   : > { %1940 = vmatmul.mubr.msk.bf16.gmra.mrb[28].mxu1 %vm1352_vm8, %v1340_v24 }
 0x1e0   : > { %v1307_v29 = vsel %vm1018_vm7, %v1290_v7, %v2327_v13  ;;  %v1035_v30 = vsel %vm1018_vm7, %v1017_v6, %v2326_v51 }
 0x1e1   : > { %v1332_v59 = vpack.c.bf16 %v1307_v29, %v1035_v30 }
 0x1e3   : > { %1908 = vmatmul.mubr.msk.bf16.gmra.mrb[32].mxu0 %vm1352_vm8, %v1332_v59 }
 0x26f   : > { %v1445_v49 = vpop.f32.mrb[0].mxu0 }
 0x270   : > { %v1877_v1 = vpop.f32.mrb[1].mxu0 }
 0x271   : > { %v1448_v45 = vpop.f32.mrb[2].mxu0 }
 0x272   : > { %v1878_v37 = vpop.f32.mrb[3].mxu0 }
 0x27a   : > { %v1517_v53 = vpop.f32.mrb[0].mxu1 }
 0x27b   : > { %v1598_v43 = vrot.slane %v1517_v53, 7  ;;  %v1650_v9 = vmax.f32 %v1448_v45, %v1517_v53  ;;  %v1913_v2 = vpop.f32.mrb[1].mxu1 }
 0x27c   : > { %v1520_v61 = vpop.f32.mrb[2].mxu1 }
 0x27d   : > { %v1633_v34 = vsel %vm1631_vm9, -inf, %v1598_v43  ;;  %v1599_v35 = vrot.slane %v1520_v61, 7  ;;  %v1914_v19 = vpop.f32.mrb[3].mxu1 }
 0x27e   : > { %v1667_v39 = vmax.f32 %v1650_v9, %v1633_v34  ;;  %v1453_v52 = vpop.f32.mrb[4].mxu0 }
 0x27f   : > { %v1634_v41 = vsel %vm1631_vm9, -inf, %v1599_v35  ;;  %v1651_v22 = vmax.f32 %v1453_v52, %v1520_v61  ;;  %v1881_v63 = vpop.f32.mrb[5].mxu0 }
 0x280   : > { %v1456_v57 = vpop.f32.mrb[6].mxu0 }
 0x281   : > { %v1668_v12 = vmax.f32 %v1651_v22, %v1634_v41  ;;  %v1882_v14 = vpop.f32.mrb[7].mxu0 }
 0x282   : > { %v1525_v56 = vpop.f32.mrb[4].mxu1 }
 0x283   : > { %v1705_v33 = vmax.f32 %v1667_v39, %v1668_v12  ;;  %v1600_v31 = vrot.slane %v1525_v56, 7  ;;  %v1652_v25 = vmax.f32 %v1456_v57, %v1525_v56  ;;  %v1917_v18 = vpop.f32.mrb[5].mxu1 }
 0x284   : > { %v1528_v60 = vpop.f32.mrb[6].mxu1 }
 0x285   : > { %1714 = vst.msk [vmem:[%s3223_s29] sm:$0xff] %vm1713_vm10, %v1705_v33  ;;  %v1635_v17 = vsel %vm1631_vm9, -inf, %v1600_v31  ;;  %v1601_v27 = vrot.slane %v1528_v60, 7  ;;  %v1918_v62 = vpop.f32.mrb[7].mxu1 }
 0x286   : > { %v1669_v0 = vmax.f32 %v1652_v25, %v1635_v17  ;;  %v1461_v16 = vpop.f32.mrb[8].mxu0 }
 0x287   : > { %v1636_v26 = vsel %vm1631_vm9, -inf, %v1601_v27  ;;  %v1653_v5 = vmax.f32 %v1461_v16, %v1528_v60  ;;  %v1885_v23 = vpop.f32.mrb[9].mxu0 }
 0x288   : > { %v1698_v44 = vmax.f32 %v1668_v12, %v1669_v0  ;;  %v1464_v36 = vpop.f32.mrb[10].mxu0 }
 0x289   : > { %v1670_v32 = vmax.f32 %v1653_v5, %v1636_v26  ;;  %v1886_v3 = vpop.f32.mrb[11].mxu0 }
 0x28a   : > { %v1533_v20 = vpop.f32.mrb[8].mxu1 }
 0x28b   : > { %v1706_v58 = vmax.f32 %v1698_v44, %v1670_v32  ;;  %v1602_v10 = vrot.slane %v1533_v20, 7  ;;  %v1654_v38 = vmax.f32 %v1464_v36, %v1533_v20  ;;  %v1921_v4 = vpop.f32.mrb[9].mxu1 }
 0x28c   : > { %v1536_v46 = vpop.f32.mrb[10].mxu1 }
 0x28d   : > { %1715 = vst.msk [vmem:[%s3223_s29 + $0x8] sm:$0xff] %vm1713_vm10, %v1706_v58  ;;  %v1637_v7 = vsel %vm1631_vm9, -inf, %v1602_v10  ;;  %v1603_v47 = vrot.slane %v1536_v46, 7  ;;  %v1922_v55 = vpop.f32.mrb[11].mxu1 }
 0x28e   : > { %v1671_v8 = vmax.f32 %v1654_v38, %v1637_v7  ;;  %v1469_v54 = vpop.f32.mrb[12].mxu0 }
 0x28f   : > { %v1638_v15 = vsel %vm1631_vm9, -inf, %v1603_v47  ;;  %v1655_v40 = vmax.f32 %v1469_v54, %v1536_v46  ;;  %v1889_v28 = vpop.f32.mrb[13].mxu0 }
 0x290   : > { %v1699_v50 = vmax.f32 %v1670_v32, %v1671_v8  ;;  %v1472_v42 = vpop.f32.mrb[14].mxu0 }
 0x291   : > { %v1672_v48 = vmax.f32 %v1655_v40, %v1638_v15  ;;  %v1890_v21 = vpop.f32.mrb[15].mxu0 }
 0x292   : > { %v1541_v24 = vpop.f32.mrb[12].mxu1 }
 0x293   : > { %v1707_v11 = vmax.f32 %v1699_v50, %v1672_v48  ;;  %v1604_v13 = vrot.slane %v1541_v24, 7  ;;  %v1656_v51 = vmax.f32 %v1472_v42, %v1541_v24  ;;  %v1925_v6 = vpop.f32.mrb[13].mxu1 }
 0x294   : > { %v1544_v29 = vpop.f32.mrb[14].mxu1 }
 0x295   : > { %1716 = vst.msk [vmem:[%s3223_s29 + $0x10] sm:$0xff] %vm1713_vm10, %v1707_v11  ;;  %v1639_v30 = vsel %vm1631_vm9, -inf, %v1604_v13  ;;  %v1605_v59 = vrot.slane %v1544_v29, 7  ;;  %v1926_v49 = vpop.f32.mrb[15].mxu1 }
 0x296   : > { %v1673_v1 = vmax.f32 %v1656_v51, %v1639_v30  ;;  %v1477_v45 = vpop.f32.mrb[16].mxu0 }
 0x297   : > { %v1640_v37 = vsel %vm1631_vm9, -inf, %v1605_v59  ;;  %v1657_v53 = vmax.f32 %v1477_v45, %v1544_v29  ;;  %v1893_v43 = vpop.f32.mrb[17].mxu0 }
 0x298   : > { %v1700_v9 = vmax.f32 %v1672_v48, %v1673_v1  ;;  %v1480_v2 = vpop.f32.mrb[18].mxu0 }
 0x299   : > { %v1674_v61 = vmax.f32 %v1657_v53, %v1640_v37  ;;  %v1894_v34 = vpop.f32.mrb[19].mxu0 }
 0x29a   : > { %v1549_v35 = vpop.f32.mrb[16].mxu1 }
 0x29b   : > { %v1708_v19 = vmax.f32 %v1700_v9, %v1674_v61  ;;  %v1606_v39 = vrot.slane %v1549_v35, 7  ;;  %v1658_v52 = vmax.f32 %v1480_v2, %v1549_v35  ;;  %v1929_v41 = vpop.f32.mrb[17].mxu1 }
 0x29c   : > { %v1552_v22 = vpop.f32.mrb[18].mxu1 }
 0x29d   : > { %1717 = vst.msk [vmem:[%s3223_s29 + $0x18] sm:$0xff] %vm1713_vm10, %v1708_v19  ;;  %v1641_v63 = vsel %vm1631_vm9, -inf, %v1606_v39  ;;  %v1607_v57 = vrot.slane %v1552_v22, 7  ;;  %v1930_v12 = vpop.f32.mrb[19].mxu1 }
 0x29e   : > { %v1675_v14 = vmax.f32 %v1658_v52, %v1641_v63  ;;  %v1485_v56 = vpop.f32.mrb[20].mxu0 }
 0x29f   : > { %v1642_v33 = vsel %vm1631_vm9, -inf, %v1607_v57  ;;  %v1659_v31 = vmax.f32 %v1485_v56, %v1552_v22  ;;  %v1897_v25 = vpop.f32.mrb[21].mxu0 }
 0x2a0   : > { %v1701_v18 = vmax.f32 %v1674_v61, %v1675_v14  ;;  %v1488_v60 = vpop.f32.mrb[22].mxu0 }
 0x2a1   : > { %v1676_v17 = vmax.f32 %v1659_v31, %v1642_v33  ;;  %v1898_v27 = vpop.f32.mrb[23].mxu0 }
 0x2a2   : > { %v1557_v62 = vpop.f32.mrb[20].mxu1 }
 0x2a3   : > { %v1709_v0 = vmax.f32 %v1701_v18, %v1676_v17  ;;  %v1608_v16 = vrot.slane %v1557_v62, 7  ;;  %v1660_v26 = vmax.f32 %v1488_v60, %v1557_v62  ;;  %v1933_v5 = vpop.f32.mrb[21].mxu1 }
 0x2a4   : > { %v1560_v23 = vpop.f32.mrb[22].mxu1 }
 0x2a5   : > { %1718 = vst.msk [vmem:[%s3223_s29 + $0x20] sm:$0xff] %vm1713_vm10, %v1709_v0  ;;  %v1643_v44 = vsel %vm1631_vm9, -inf, %v1608_v16  ;;  %v1609_v36 = vrot.slane %v1560_v23, 7  ;;  %v1934_v32 = vpop.f32.mrb[23].mxu1 }
 0x2a6   : > { %v1677_v3 = vmax.f32 %v1660_v26, %v1643_v44  ;;  %v1493_v20 = vpop.f32.mrb[24].mxu0 }
 0x2a7   : > { %v1644_v58 = vsel %vm1631_vm9, -inf, %v1609_v36  ;;  %v1661_v10 = vmax.f32 %v1493_v20, %v1560_v23  ;;  %v1901_v38 = vpop.f32.mrb[25].mxu0 }
 0x2a8   : > { %v1702_v4 = vmax.f32 %v1676_v17, %v1677_v3  ;;  %v1496_v46 = vpop.f32.mrb[26].mxu0 }
 0x2a9   : > { %v1678_v7 = vmax.f32 %v1661_v10, %v1644_v58  ;;  %v1902_v47 = vpop.f32.mrb[27].mxu0 }
 0x2aa   : > { %v1565_v55 = vpop.f32.mrb[24].mxu1 }
 0x2ab   : > { %v1710_v8 = vmax.f32 %v1702_v4, %v1678_v7  ;;  %v1610_v54 = vrot.slane %v1565_v55, 7  ;;  %v1662_v15 = vmax.f32 %v1496_v46, %v1565_v55  ;;  %v1937_v40 = vpop.f32.mrb[25].mxu1 }
 0x2ac   : > { %v1568_v28 = vpop.f32.mrb[26].mxu1 }
 0x2ad   : > { %1719 = vst.msk [vmem:[%s3223_s29 + $0x28] sm:$0xff] %vm1713_vm10, %v1710_v8  ;;  %v1645_v50 = vsel %vm1631_vm9, -inf, %v1610_v54  ;;  %v1611_v42 = vrot.slane %v1568_v28, 7  ;;  %v1938_v48 = vpop.f32.mrb[27].mxu1 }
 0x2ae   : > { %v1679_v21 = vmax.f32 %v1662_v15, %v1645_v50  ;;  %v1501_v24 = vpop.f32.mrb[28].mxu0 }
 0x2af   : > { %v1646_v11 = vsel %vm1631_vm9, -inf, %v1611_v42  ;;  %v1663_v13 = vmax.f32 %v1501_v24, %v1568_v28  ;;  %v1905_v51 = vpop.f32.mrb[29].mxu0 }
 0x2b0   : > { %v1703_v6 = vmax.f32 %v1678_v7, %v1679_v21  ;;  %v1504_v29 = vpop.f32.mrb[30].mxu0 }
 0x2b1   : > { %v1680_v30 = vmax.f32 %v1663_v13, %v1646_v11  ;;  %v1906_v59 = vpop.f32.mrb[31].mxu0 }
 0x2b2   : > { %v1573_v49 = vpop.f32.mrb[28].mxu1 }
 0x2b3   : > { %v1711_v1 = vmax.f32 %v1703_v6, %v1680_v30  ;;  %v1612_v45 = vrot.slane %v1573_v49, 7  ;;  %v1664_v37 = vmax.f32 %v1504_v29, %v1573_v49  ;;  %v1941_v53 = vpop.f32.mrb[29].mxu1 }
 0x2b4   : > { %v1576_v43 = vpop.f32.mrb[30].mxu1 }
 0x2b5   : > { %1720 = vst.msk [vmem:[%s3223_s29 + $0x30] sm:$0xff] %vm1713_vm10, %v1711_v1  ;;  %v1647_v9 = vsel %vm1631_vm9, -inf, %v1612_v45  ;;  %v1613_v2 = vrot.slane %v1576_v43, 7  ;;  %v1942_v61 = vpop.f32.mrb[31].mxu1 }
 0x2b6   : > { %v1681_v34 = vmax.f32 %v1664_v37, %v1647_v9  ;;  %v1509_v35 = vpop.f32.mrb[32].mxu0 }
 0x2b7   : > { %v1648_v19 = vsel %vm1631_vm9, -inf, %v1613_v2  ;;  %v1665_v39 = vmax.f32 %v1509_v35, %v1576_v43  ;;  %v1909_v52 = vpop.f32.mrb[33].mxu0 }
 0x2b8   : > { %v1704_v41 = vmax.f32 %v1680_v30, %v1681_v34  ;;  %v1512_v22 = vpop.f32.mrb[34].mxu0 }
 0x2b9   : > { %v1682_v63 = vmax.f32 %v1665_v39, %v1648_v19  ;;  %v1910_v57 = vpop.f32.mrb[35].mxu0 }
 0x2bb   : > { %v1712_v12 = vmax.f32 %v1704_v41, %v1682_v63 }
 0x2bd   : > { %1721 = vst.msk [vmem:[%s3223_s29 + $0x38] sm:$0xff] %vm1713_vm10, %v1712_v12 }
 0x2be   : > { %2343 = shalt.err (!%p2340_p5)
}
 0x2bf   : > { %s2344_s18 = scalar_lea.hbm %s3258_s6, 1024  ;;  %s2348_s24 = scalar_lea.hbm %s3314_s2, 2048 }
 0x2c0   : > { %p2345_p6 = scmp.ne.s32.totalorder %s3258_s6, %s2344_s18  ;;  %p2349_p10 = scmp.lt.u32.totalorder %s3258_s6, %s3314_s2 }
 0x2c1   : > { %p2350_p11 = scmp.lt.u32.totalorder %s2348_s24, %s2344_s18  ;;  %p2352_p13 = scmp.lt.u32.totalorder %s2344_s18, %s3258_s6 }
 0x2c2   : > { %p2346_p7 = pnand %p2345_p6, %p2486_p4 }
 0x2c3   : > { %p2351_p12 = por %p2350_p11, %p2349_p10 }
 0x2c4   : > { %p2347_p9 = pneg %p2346_p7 }
 0x2c5   : > { %p2353_p0 = por %p2352_p13, %p2351_p12 }
 0x2c7   : > { %p2354_p1 = pnand %p2353_p0, %p2347_p9 }
 0x2c9   : > { %2357 = shalt.err (!%p2354_p1)
}
 0x2ca   : > { %s2429_s27 = smov 128   ;;  %s2430_s28 = smov 8  }
 0x2cb   : > { %1948 = dma.vmem_to_hbm [thread:$0]  (%p2486_p4), %s3260_s3, 1024, %s3258_s6, %s3266_s12, %s2429_s27, %s2429_s27, %s2430_s28  }
 0x2cc PF: > { %p1954_p2 = scmp.ge.s32.totalorder %s2408_s14, 2  ;;  %s1753_s29 = sand.u32 1, %s2388_s9  }
 0x2cd   : > { %s1754_s30 = scalar_lea.sflag [#allocation3], %s1753_s29 }
 0x2ce   : > { %p1951_p3 = pnand %p1954_p2, %p2493_p8 }
 0x2d0   : > { %2383 = dma.done.wait (!%p1951_p3), %s1754_s30, 1024  }
 0x2d1   : > { %2385 = vsyncadd (!%p1951_p3), %s1754_s30, 4294966272  ;;  %s15_s14 = sadd.s32 1, %s2408_s14   ;;  %s3317_s9 = smov %s2392_s10 }
 0x2d2   : > { %p12_p5 = scmp.ge.s32.totalorder %s15_s14, 4   ;;  %s3318_s10 = smov %s2396_s11 }
 0x2d3   : > { %s3319_s11 = smov %s2499_s22  ;;  %s3320_s12 = smov %s2404_s13 }
 0x2d4   : > { %s3321_s13 = smov %s3323_s17  ;;  %14 = sbr.rel (!%p12_p5) target bundleno = 4 (0x4), region = 63 }
 0x2db   :  { %1759 = vsyncpa [#allocation3], 1 }
 0x2dc   :  { %1761 = vsyncpa [#allocation3 + $0x1], 1 }

</bundles_post_ra>
